<compile_context>
chip_gen: v6e
topology: v6e:2x2x1
jax: 0.10.0
libtpu: 0.0.40
codegen_flags: <defaults>
</compile_context>

<pallas_src>
import functools
import math

import jax
import jax.numpy as jnp
from jax import lax
from jax.experimental import pallas as pl
from jax.experimental.pallas import tpu as pltpu

NUM_HEADS = 12


# ----------------------------------------------------------------------------
# Fused kernel: one grid step per batch element.
#   x (S, H) --MXU--> qkv (S, 3H) --per-head attention--> ctx (S, H) --MXU--> out
#   probs (nh, S, S) is also emitted (module API requires it).
# ----------------------------------------------------------------------------
def _make_fused_attention_kernel(num_heads, head_dim, hidden, mxu_dtype):
    inv_sqrt_d = 1.0 / math.sqrt(head_dim)

    def kernel(x_ref, wqkv_ref, bqkv_ref, wo_ref, bo_ref,
               out_ref, probs_ref, ctx_scratch):
        # x_ref: (S, H)      wqkv_ref: (3H, H)   bqkv_ref: (1, 3H)
        # wo_ref: (H, H)     bo_ref: (1, H)
        # out_ref: (S, H)    probs_ref: (nh, S, S)   ctx_scratch: (S, H) f32

        # ---- fused QKV projection (torch Linear: y = x @ W^T + b) ----
        x = x_ref[...].astype(mxu_dtype)
        wqkv = wqkv_ref[...].astype(mxu_dtype)
        qkv = lax.dot_general(x, wqkv, (((1,), (1,)), ((), ())),
                              preferred_element_type=jnp.float32)
        qkv = qkv + bqkv_ref[...]                      # (S, 3H) f32

        # ---- per-head attention; all slices are static lane slices ----
        for h in range(num_heads):
            lo = h * head_dim
            q = qkv[:, lo:lo + head_dim].astype(mxu_dtype)
            k = qkv[:, hidden + lo:hidden + lo + head_dim].astype(mxu_dtype)
            v = qkv[:, 2 * hidden + lo:2 * hidden + lo + head_dim].astype(mxu_dtype)

            # scores = q @ k^T / sqrt(d)  (contract minor dims; no transpose)
            s = lax.dot_general(q, k, (((1,), (1,)), ((), ())),
                                preferred_element_type=jnp.float32) * inv_sqrt_d

            # softmax in f32; normalization via EUP approximate reciprocal
            m = jnp.max(s, axis=-1, keepdims=True)
            e = jnp.exp(s - m)
            denom = jnp.sum(e, axis=-1, keepdims=True)
            p = e * pl.reciprocal(denom, approx=True)

            probs_ref[h, :, :] = p.astype(probs_ref.dtype)
            ctx_h = jnp.dot(p.astype(mxu_dtype), v,
                            preferred_element_type=jnp.float32)
            ctx_scratch[:, lo:lo + head_dim] = ctx_h   # head-merged in place

        # ---- output projection ----
        ctx = ctx_scratch[...].astype(mxu_dtype)       # (S, H)
        wo = wo_ref[...].astype(mxu_dtype)
        out = lax.dot_general(ctx, wo, (((1,), (1,)), ((), ())),
                              preferred_element_type=jnp.float32)
        out_ref[...] = (out + bo_ref[...]).astype(out_ref.dtype)

    return kernel


def attention_forward(hidden_states, params, *, mxu_dtype=jnp.float32):
    b, s, h = hidden_states.shape
    nh = NUM_HEADS
    assert h % nh == 0, "hidden_size must be divisible by num_heads"
    d = h // nh

    # Fused QKV weight / bias (single MXU pass, single resident weight slab).
    wqkv = jnp.concatenate([params["wq"], params["wk"], params["wv"]], axis=0)   # (3H, H)
    bqkv = jnp.concatenate([params["bq"], params["bk"], params["bv"]], axis=0)   # (3H,)
    bqkv = bqkv.reshape(1, 3 * h)
    bo = params["bo"].reshape(1, h)

    # TODO(synk): for large S, tile the kv axis flash-style (online softmax) and make
    # the materialized attention-probs output optional -- the module API requires
    # probs, but at realistic S it dominates HBM traffic / VMEM (esp. v7x 64 MiB).
    out, probs = pl.pallas_call(
        _make_fused_attention_kernel(nh, d, h, mxu_dtype),
        out_shape=(
            jax.ShapeDtypeStruct((b, s, h), jnp.float32),          # attention output
            jax.ShapeDtypeStruct((b, nh, s, s), jnp.float32),      # attention probs
        ),
        grid=(b,),
        in_specs=[
            pl.BlockSpec((None, s, h), lambda i: (i, 0, 0)),       # x per batch
            pl.BlockSpec((3 * h, h), lambda i: (0, 0)),            # Wqkv resident
            pl.BlockSpec((1, 3 * h), lambda i: (0, 0)),            # bqkv resident
            pl.BlockSpec((h, h), lambda i: (0, 0)),                # Wo resident
            pl.BlockSpec((1, h), lambda i: (0, 0)),                # bo resident
        ],
        out_specs=(
            pl.BlockSpec((None, s, h), lambda i: (i, 0, 0)),
            pl.BlockSpec((None, nh, s, s), lambda i: (i, 0, 0, 0)),
        ),
        scratch_shapes=[pltpu.VMEM((s, h), jnp.float32)],          # merged context
        compiler_params=pltpu.CompilerParams(
            dimension_semantics=("parallel",)),
    )(hidden_states, wqkv, bqkv, params["wo"], bo)

    return out, probs


def init_params(key, hidden_size):
    keys = jax.random.split(key, 8)
    scale = 1.0 / math.sqrt(hidden_size)

    def w(k):
        return jax.random.uniform(k, (hidden_size, hidden_size),
                                  jnp.float32, -scale, scale)

    def bb(k):
        return jax.random.uniform(k, (hidden_size,), jnp.float32, -scale, scale)

    return {
        "wq": w(keys[0]), "bq": bb(keys[1]),
        "wk": w(keys[2]), "bk": bb(keys[3]),
        "wv": w(keys[4]), "bv": bb(keys[5]),
        "wo": w(keys[6]), "bo": bb(keys[7]),
    }


if __name__ == "__main__":
    B, S, HIDDEN = 2, 8, 96          # 96 / 12 heads -> head_dim 8
    key = jax.random.PRNGKey(0)
    k_x, k_p = jax.random.split(key)
    hidden_states = jax.random.normal(k_x, (B, S, HIDDEN), jnp.float32)
    params = init_params(k_p, HIDDEN)

    fwd_f32 = jax.jit(functools.partial(attention_forward, mxu_dtype=jnp.float32))
    fwd_bf16 = jax.jit(functools.partial(attention_forward, mxu_dtype=jnp.bfloat16))

    out, probs = fwd_f32(hidden_states, params)
    jax.block_until_ready((out, probs))

    # Pure-JAX reference (mirrors the PyTorch module exactly).
    def ref(x, p):
        def lin(z, w, bias):
            return z @ w.T + bias
        q = lin(x, p["wq"], p["bq"]).reshape(B, S, NUM_HEADS, -1).transpose(0, 2, 1, 3)
        kk = lin(x, p["wk"], p["bk"]).reshape(B, S, NUM_HEADS, -1).transpose(0, 2, 1, 3)
        v = lin(x, p["wv"], p["bv"]).reshape(B, S, NUM_HEADS, -1).transpose(0, 2, 1, 3)
        sc = jnp.einsum("bhqd,bhkd->bhqk", q, kk) / math.sqrt(q.shape[-1])
        pr = jax.nn.softmax(sc, axis=-1)
        ctx = jnp.einsum("bhqk,bhkd->bhqd", pr, v).transpose(0, 2, 1, 3).reshape(B, S, HIDDEN)
        return lin(ctx, p["wo"], p["bo"]), pr

    out_ref, probs_ref = ref(hidden_states, params)

    # f32 MXU path: tight check (tolerance allows for the EUP approx reciprocal).
    assert jnp.allclose(out, out_ref, atol=5e-3, rtol=5e-3)
    assert jnp.allclose(probs, probs_ref, atol=2e-3, rtol=2e-3)

    # bf16-at-MXU path (v6e/v7x recommendation): f32 accumulation, looser check.
    out_bf, probs_bf = fwd_bf16(hidden_states, params)
    jax.block_until_ready((out_bf, probs_bf))
    assert jnp.allclose(out_bf, out_ref, atol=1e-1, rtol=1e-1)
    assert jnp.allclose(probs_bf, probs_ref, atol=2e-2, rtol=2e-2)

    print("KERNEL_OK")
</pallas_src>

<mosaic_0001>
module attributes {stable_mosaic.version = 11 : i64} {
  func.func @kernel(%arg0: i32, %arg1: memref<1x8x96xf32, #tpu.memory_space<vmem>>, %arg2: memref<288x96xf32, #tpu.memory_space<vmem>>, %arg3: memref<1x288xf32, #tpu.memory_space<vmem>>, %arg4: memref<96x96xf32, #tpu.memory_space<vmem>>, %arg5: memref<1x96xf32, #tpu.memory_space<vmem>>, %arg6: memref<1x8x96xf32, #tpu.memory_space<vmem>>, %arg7: memref<1x12x8x8xf32, #tpu.memory_space<vmem>>, %arg8: memref<8x96xf32, #tpu.memory_space<vmem>>) attributes {dimension_semantics = [#tpu.dimension_semantics<parallel>], iteration_bounds = array<i64: 2>, scalar_prefetch = 0 : i64, scratch_operands = 1 : i64, tpu.core_type = #tpu.core_type<tc>, window_params = [{transform_indices = @transform_0, window_bounds = array<i64: 1, 8, 96>}, {pipeline_mode = #tpu.pipeline_mode<synchronous>, transform_indices = @transform_1, window_bounds = array<i64: 288, 96>}, {pipeline_mode = #tpu.pipeline_mode<synchronous>, transform_indices = @transform_2, window_bounds = array<i64: 1, 288>}, {pipeline_mode = #tpu.pipeline_mode<synchronous>, transform_indices = @transform_3, window_bounds = array<i64: 96, 96>}, {pipeline_mode = #tpu.pipeline_mode<synchronous>, transform_indices = @transform_4, window_bounds = array<i64: 1, 96>}, {transform_indices = @transform_5, window_bounds = array<i64: 1, 8, 96>}, {transform_indices = @transform_6, window_bounds = array<i64: 1, 12, 8, 8>}]} {
    %c0 = arith.constant 0 : index
    %c0_0 = arith.constant 0 : index
    %c0_1 = arith.constant 0 : index
    %0 = vector.load %arg1[%c0, %c0_0, %c0_1] : memref<1x8x96xf32, #tpu.memory_space<vmem>>, vector<1x8x96xf32>
    %1 = vector.shape_cast %0 : vector<1x8x96xf32> to vector<8x96xf32>
    %c0_2 = arith.constant 0 : index
    %c0_3 = arith.constant 0 : index
    %2 = vector.load %arg2[%c0_2, %c0_3] : memref<288x96xf32, #tpu.memory_space<vmem>>, vector<288x96xf32>
    %cst = arith.constant dense<0.000000e+00> : vector<8x288xf32>
    %3 = tpu.matmul %1, %2, %cst {dimension_numbers = #tpu.dot_dimension_numbers<[1], [1], [0], [0], [0, 0, 1, 0], [], []>} : vector<8x96xf32>, vector<288x96xf32>, vector<8x288xf32> -> vector<8x288xf32>
    %c0_4 = arith.constant 0 : index
    %c0_5 = arith.constant 0 : index
    %4 = vector.load %arg3[%c0_4, %c0_5] : memref<1x288xf32, #tpu.memory_space<vmem>>, vector<1x288xf32>
    %5 = vector.broadcast %4 : vector<1x288xf32> to vector<8x288xf32>
    %6 = arith.addf %3, %5 : vector<8x288xf32>
    %7 = vector.extract_strided_slice %6 {offsets = [0, 0], sizes = [8, 8], strides = [1, 1]} : vector<8x288xf32> to vector<8x8xf32>
    %8 = vector.extract_strided_slice %6 {offsets = [0, 96], sizes = [8, 8], strides = [1, 1]} : vector<8x288xf32> to vector<8x8xf32>
    %9 = vector.extract_strided_slice %6 {offsets = [0, 192], sizes = [8, 8], strides = [1, 1]} : vector<8x288xf32> to vector<8x8xf32>
    %cst_6 = arith.constant dense<0.000000e+00> : vector<8x8xf32>
    %10 = tpu.matmul %7, %8, %cst_6 {dimension_numbers = #tpu.dot_dimension_numbers<[1], [1], [0], [0], [0, 0, 1, 0], [], []>} : vector<8x8xf32>, vector<8x8xf32>, vector<8x8xf32> -> vector<8x8xf32>
    %cst_7 = arith.constant 0.353553385 : f32
    %11 = vector.broadcast %cst_7 : f32 to vector<8x8xf32>
    %12 = arith.mulf %10, %11 : vector<8x8xf32>
    %cst_8 = arith.constant dense<0xFF800000> : vector<8xf32>
    %13 = vector.multi_reduction <maximumf>, %12, %cst_8 [1] : vector<8x8xf32> to vector<8xf32>
    %14 = vector.shape_cast %13 : vector<8xf32> to vector<8x1xf32>
    %15 = vector.broadcast %14 : vector<8x1xf32> to vector<8x8xf32>
    %16 = arith.subf %12, %15 : vector<8x8xf32>
    %17 = math.exp %16 : vector<8x8xf32>
    %cst_9 = arith.constant dense<0.000000e+00> : vector<8xf32>
    %18 = vector.multi_reduction <add>, %17, %cst_9 [1] : vector<8x8xf32> to vector<8xf32>
    %19 = vector.shape_cast %18 : vector<8xf32> to vector<8x1xf32>
    %20 = tpu.reciprocal %19 {approx = true} : vector<8x1xf32> -> vector<8x1xf32>
    %21 = vector.broadcast %20 : vector<8x1xf32> to vector<8x8xf32>
    %22 = arith.mulf %17, %21 : vector<8x8xf32>
    %c0_10 = arith.constant 0 : index
    %c0_11 = arith.constant 0 : index
    %c0_12 = arith.constant 0 : index
    %c0_13 = arith.constant 0 : index
    %23 = vector.load %arg7[%c0_10, %c0_11, %c0_12, %c0_13] : memref<1x12x8x8xf32, #tpu.memory_space<vmem>>, vector<1x1x8x8xf32>
    %24 = vector.shape_cast %23 : vector<1x1x8x8xf32> to vector<8x8xf32>
    %25 = vector.shape_cast %22 : vector<8x8xf32> to vector<1x1x8x8xf32>
    tpu.vector_store %arg7[%c0_10, %c0_11, %c0_12, %c0_13], %25 {strides = array<i32>} : memref<1x12x8x8xf32, #tpu.memory_space<vmem>>, vector<1x1x8x8xf32>,
    %cst_14 = arith.constant dense<0.000000e+00> : vector<8x8xf32>
    %26 = tpu.matmul %22, %9, %cst_14 {dimension_numbers = #tpu.dot_dimension_numbers<[1], [0], [0], [1], [0, 0, 1, 1], [], []>} : vector<8x8xf32>, vector<8x8xf32>, vector<8x8xf32> -> vector<8x8xf32>
    %c0_15 = arith.constant 0 : index
    %c0_16 = arith.constant 0 : index
    %27 = vector.load %arg8[%c0_15, %c0_16] : memref<8x96xf32, #tpu.memory_space<vmem>>, vector<8x8xf32>
    tpu.vector_store %arg8[%c0_15, %c0_16], %26 {strides = array<i32>} : memref<8x96xf32, #tpu.memory_space<vmem>>, vector<8x8xf32>,
    %28 = vector.extract_strided_slice %6 {offsets = [0, 8], sizes = [8, 8], strides = [1, 1]} : vector<8x288xf32> to vector<8x8xf32>
    %29 = vector.extract_strided_slice %6 {offsets = [0, 104], sizes = [8, 8], strides = [1, 1]} : vector<8x288xf32> to vector<8x8xf32>
    %30 = vector.extract_strided_slice %6 {offsets = [0, 200], sizes = [8, 8], strides = [1, 1]} : vector<8x288xf32> to vector<8x8xf32>
    %cst_17 = arith.constant dense<0.000000e+00> : vector<8x8xf32>
    %31 = tpu.matmul %28, %29, %cst_17 {dimension_numbers = #tpu.dot_dimension_numbers<[1], [1], [0], [0], [0, 0, 1, 0], [], []>} : vector<8x8xf32>, vector<8x8xf32>, vector<8x8xf32> -> vector<8x8xf32>
    %cst_18 = arith.constant 0.353553385 : f32
    %32 = vector.broadcast %cst_18 : f32 to vector<8x8xf32>
    %33 = arith.mulf %31, %32 : vector<8x8xf32>
    %cst_19 = arith.constant dense<0xFF800000> : vector<8xf32>
    %34 = vector.multi_reduction <maximumf>, %33, %cst_19 [1] : vector<8x8xf32> to vector<8xf32>
    %35 = vector.shape_cast %34 : vector<8xf32> to vector<8x1xf32>
    %36 = vector.broadcast %35 : vector<8x1xf32> to vector<8x8xf32>
    %37 = arith.subf %33, %36 : vector<8x8xf32>
    %38 = math.exp %37 : vector<8x8xf32>
    %cst_20 = arith.constant dense<0.000000e+00> : vector<8xf32>
    %39 = vector.multi_reduction <add>, %38, %cst_20 [1] : vector<8x8xf32> to vector<8xf32>
    %40 = vector.shape_cast %39 : vector<8xf32> to vector<8x1xf32>
    %41 = tpu.reciprocal %40 {approx = true} : vector<8x1xf32> -> vector<8x1xf32>
    %42 = vector.broadcast %41 : vector<8x1xf32> to vector<8x8xf32>
    %43 = arith.mulf %38, %42 : vector<8x8xf32>
    %c0_21 = arith.constant 0 : index
    %c1 = arith.constant 1 : index
    %c0_22 = arith.constant 0 : index
    %c0_23 = arith.constant 0 : index
    %44 = vector.load %arg7[%c0_21, %c1, %c0_22, %c0_23] : memref<1x12x8x8xf32, #tpu.memory_space<vmem>>, vector<1x1x8x8xf32>
    %45 = vector.shape_cast %44 : vector<1x1x8x8xf32> to vector<8x8xf32>
    %46 = vector.shape_cast %43 : vector<8x8xf32> to vector<1x1x8x8xf32>
    tpu.vector_store %arg7[%c0_21, %c1, %c0_22, %c0_23], %46 {strides = array<i32>} : memref<1x12x8x8xf32, #tpu.memory_space<vmem>>, vector<1x1x8x8xf32>,
    %cst_24 = arith.constant dense<0.000000e+00> : vector<8x8xf32>
    %47 = tpu.matmul %43, %30, %cst_24 {dimension_numbers = #tpu.dot_dimension_numbers<[1], [0], [0], [1], [0, 0, 1, 1], [], []>} : vector<8x8xf32>, vector<8x8xf32>, vector<8x8xf32> -> vector<8x8xf32>
    %c0_25 = arith.constant 0 : index
    %c8 = arith.constant 8 : index
    %48 = vector.load %arg8[%c0_25, %c8] : memref<8x96xf32, #tpu.memory_space<vmem>>, vector<8x8xf32>
    tpu.vector_store %arg8[%c0_25, %c8], %47 {strides = array<i32>} : memref<8x96xf32, #tpu.memory_space<vmem>>, vector<8x8xf32>,
    %49 = vector.extract_strided_slice %6 {offsets = [0, 16], sizes = [8, 8], strides = [1, 1]} : vector<8x288xf32> to vector<8x8xf32>
    %50 = vector.extract_strided_slice %6 {offsets = [0, 112], sizes = [8, 8], strides = [1, 1]} : vector<8x288xf32> to vector<8x8xf32>
    %51 = vector.extract_strided_slice %6 {offsets = [0, 208], sizes = [8, 8], strides = [1, 1]} : vector<8x288xf32> to vector<8x8xf32>
    %cst_26 = arith.constant dense<0.000000e+00> : vector<8x8xf32>
    %52 = tpu.matmul %49, %50, %cst_26 {dimension_numbers = #tpu.dot_dimension_numbers<[1], [1], [0], [0], [0, 0, 1, 0], [], []>} : vector<8x8xf32>, vector<8x8xf32>, vector<8x8xf32> -> vector<8x8xf32>
    %cst_27 = arith.constant 0.353553385 : f32
    %53 = vector.broadcast %cst_27 : f32 to vector<8x8xf32>
    %54 = arith.mulf %52, %53 : vector<8x8xf32>
    %cst_28 = arith.constant dense<0xFF800000> : vector<8xf32>
    %55 = vector.multi_reduction <maximumf>, %54, %cst_28 [1] : vector<8x8xf32> to vector<8xf32>
    %56 = vector.shape_cast %55 : vector<8xf32> to vector<8x1xf32>
    %57 = vector.broadcast %56 : vector<8x1xf32> to vector<8x8xf32>
    %58 = arith.subf %54, %57 : vector<8x8xf32>
    %59 = math.exp %58 : vector<8x8xf32>
    %cst_29 = arith.constant dense<0.000000e+00> : vector<8xf32>
    %60 = vector.multi_reduction <add>, %59, %cst_29 [1] : vector<8x8xf32> to vector<8xf32>
    %61 = vector.shape_cast %60 : vector<8xf32> to vector<8x1xf32>
    %62 = tpu.reciprocal %61 {approx = true} : vector<8x1xf32> -> vector<8x1xf32>
    %63 = vector.broadcast %62 : vector<8x1xf32> to vector<8x8xf32>
    %64 = arith.mulf %59, %63 : vector<8x8xf32>
    %c0_30 = arith.constant 0 : index
    %c2 = arith.constant 2 : index
    %c0_31 = arith.constant 0 : index
    %c0_32 = arith.constant 0 : index
    %65 = vector.load %arg7[%c0_30, %c2, %c0_31, %c0_32] : memref<1x12x8x8xf32, #tpu.memory_space<vmem>>, vector<1x1x8x8xf32>
    %66 = vector.shape_cast %65 : vector<1x1x8x8xf32> to vector<8x8xf32>
    %67 = vector.shape_cast %64 : vector<8x8xf32> to vector<1x1x8x8xf32>
    tpu.vector_store %arg7[%c0_30, %c2, %c0_31, %c0_32], %67 {strides = array<i32>} : memref<1x12x8x8xf32, #tpu.memory_space<vmem>>, vector<1x1x8x8xf32>,
    %cst_33 = arith.constant dense<0.000000e+00> : vector<8x8xf32>
    %68 = tpu.matmul %64, %51, %cst_33 {dimension_numbers = #tpu.dot_dimension_numbers<[1], [0], [0], [1], [0, 0, 1, 1], [], []>} : vector<8x8xf32>, vector<8x8xf32>, vector<8x8xf32> -> vector<8x8xf32>
    %c0_34 = arith.constant 0 : index
    %c16 = arith.constant 16 : index
    %69 = vector.load %arg8[%c0_34, %c16] : memref<8x96xf32, #tpu.memory_space<vmem>>, vector<8x8xf32>
    tpu.vector_store %arg8[%c0_34, %c16], %68 {strides = array<i32>} : memref<8x96xf32, #tpu.memory_space<vmem>>, vector<8x8xf32>,
    %70 = vector.extract_strided_slice %6 {offsets = [0, 24], sizes = [8, 8], strides = [1, 1]} : vector<8x288xf32> to vector<8x8xf32>
    %71 = vector.extract_strided_slice %6 {offsets = [0, 120], sizes = [8, 8], strides = [1, 1]} : vector<8x288xf32> to vector<8x8xf32>
    %72 = vector.extract_strided_slice %6 {offsets = [0, 216], sizes = [8, 8], strides = [1, 1]} : vector<8x288xf32> to vector<8x8xf32>
    %cst_35 = arith.constant dense<0.000000e+00> : vector<8x8xf32>
    %73 = tpu.matmul %70, %71, %cst_35 {dimension_numbers = #tpu.dot_dimension_numbers<[1], [1], [0], [0], [0, 0, 1, 0], [], []>} : vector<8x8xf32>, vector<8x8xf32>, vector<8x8xf32> -> vector<8x8xf32>
    %cst_36 = arith.constant 0.353553385 : f32
    %74 = vector.broadcast %cst_36 : f32 to vector<8x8xf32>
    %75 = arith.mulf %73, %74 : vector<8x8xf32>
    %cst_37 = arith.constant dense<0xFF800000> : vector<8xf32>
    %76 = vector.multi_reduction <maximumf>, %75, %cst_37 [1] : vector<8x8xf32> to vector<8xf32>
    %77 = vector.shape_cast %76 : vector<8xf32> to vector<8x1xf32>
    %78 = vector.broadcast %77 : vector<8x1xf32> to vector<8x8xf32>
    %79 = arith.subf %75, %78 : vector<8x8xf32>
    %80 = math.exp %79 : vector<8x8xf32>
    %cst_38 = arith.constant dense<0.000000e+00> : vector<8xf32>
    %81 = vector.multi_reduction <add>, %80, %cst_38 [1] : vector<8x8xf32> to vector<8xf32>
    %82 = vector.shape_cast %81 : vector<8xf32> to vector<8x1xf32>
    %83 = tpu.reciprocal %82 {approx = true} : vector<8x1xf32> -> vector<8x1xf32>
    %84 = vector.broadcast %83 : vector<8x1xf32> to vector<8x8xf32>
    %85 = arith.mulf %80, %84 : vector<8x8xf32>
    %c0_39 = arith.constant 0 : index
    %c3 = arith.constant 3 : index
    %c0_40 = arith.constant 0 : index
    %c0_41 = arith.constant 0 : index
    %86 = vector.load %arg7[%c0_39, %c3, %c0_40, %c0_41] : memref<1x12x8x8xf32, #tpu.memory_space<vmem>>, vector<1x1x8x8xf32>
    %87 = vector.shape_cast %86 : vector<1x1x8x8xf32> to vector<8x8xf32>
    %88 = vector.shape_cast %85 : vector<8x8xf32> to vector<1x1x8x8xf32>
    tpu.vector_store %arg7[%c0_39, %c3, %c0_40, %c0_41], %88 {strides = array<i32>} : memref<1x12x8x8xf32, #tpu.memory_space<vmem>>, vector<1x1x8x8xf32>,
    %cst_42 = arith.constant dense<0.000000e+00> : vector<8x8xf32>
    %89 = tpu.matmul %85, %72, %cst_42 {dimension_numbers = #tpu.dot_dimension_numbers<[1], [0], [0], [1], [0, 0, 1, 1], [], []>} : vector<8x8xf32>, vector<8x8xf32>, vector<8x8xf32> -> vector<8x8xf32>
    %c0_43 = arith.constant 0 : index
    %c24 = arith.constant 24 : index
    %90 = vector.load %arg8[%c0_43, %c24] : memref<8x96xf32, #tpu.memory_space<vmem>>, vector<8x8xf32>
    tpu.vector_store %arg8[%c0_43, %c24], %89 {strides = array<i32>} : memref<8x96xf32, #tpu.memory_space<vmem>>, vector<8x8xf32>,
    %91 = vector.extract_strided_slice %6 {offsets = [0, 32], sizes = [8, 8], strides = [1, 1]} : vector<8x288xf32> to vector<8x8xf32>
    %92 = vector.extract_strided_slice %6 {offsets = [0, 128], sizes = [8, 8], strides = [1, 1]} : vector<8x288xf32> to vector<8x8xf32>
    %93 = vector.extract_strided_slice %6 {offsets = [0, 224], sizes = [8, 8], strides = [1, 1]} : vector<8x288xf32> to vector<8x8xf32>
    %cst_44 = arith.constant dense<0.000000e+00> : vector<8x8xf32>
    %94 = tpu.matmul %91, %92, %cst_44 {dimension_numbers = #tpu.dot_dimension_numbers<[1], [1], [0], [0], [0, 0, 1, 0], [], []>} : vector<8x8xf32>, vector<8x8xf32>, vector<8x8xf32> -> vector<8x8xf32>
    %cst_45 = arith.constant 0.353553385 : f32
    %95 = vector.broadcast %cst_45 : f32 to vector<8x8xf32>
    %96 = arith.mulf %94, %95 : vector<8x8xf32>
    %cst_46 = arith.constant dense<0xFF800000> : vector<8xf32>
    %97 = vector.multi_reduction <maximumf>, %96, %cst_46 [1] : vector<8x8xf32> to vector<8xf32>
    %98 = vector.shape_cast %97 : vector<8xf32> to vector<8x1xf32>
    %99 = vector.broadcast %98 : vector<8x1xf32> to vector<8x8xf32>
    %100 = arith.subf %96, %99 : vector<8x8xf32>
    %101 = math.exp %100 : vector<8x8xf32>
    %cst_47 = arith.constant dense<0.000000e+00> : vector<8xf32>
    %102 = vector.multi_reduction <add>, %101, %cst_47 [1] : vector<8x8xf32> to vector<8xf32>
    %103 = vector.shape_cast %102 : vector<8xf32> to vector<8x1xf32>
    %104 = tpu.reciprocal %103 {approx = true} : vector<8x1xf32> -> vector<8x1xf32>
    %105 = vector.broadcast %104 : vector<8x1xf32> to vector<8x8xf32>
    %106 = arith.mulf %101, %105 : vector<8x8xf32>
    %c0_48 = arith.constant 0 : index
    %c4 = arith.constant 4 : index
    %c0_49 = arith.constant 0 : index
    %c0_50 = arith.constant 0 : index
    %107 = vector.load %arg7[%c0_48, %c4, %c0_49, %c0_50] : memref<1x12x8x8xf32, #tpu.memory_space<vmem>>, vector<1x1x8x8xf32>
    %108 = vector.shape_cast %107 : vector<1x1x8x8xf32> to vector<8x8xf32>
    %109 = vector.shape_cast %106 : vector<8x8xf32> to vector<1x1x8x8xf32>
    tpu.vector_store %arg7[%c0_48, %c4, %c0_49, %c0_50], %109 {strides = array<i32>} : memref<1x12x8x8xf32, #tpu.memory_space<vmem>>, vector<1x1x8x8xf32>,
    %cst_51 = arith.constant dense<0.000000e+00> : vector<8x8xf32>
    %110 = tpu.matmul %106, %93, %cst_51 {dimension_numbers = #tpu.dot_dimension_numbers<[1], [0], [0], [1], [0, 0, 1, 1], [], []>} : vector<8x8xf32>, vector<8x8xf32>, vector<8x8xf32> -> vector<8x8xf32>
    %c0_52 = arith.constant 0 : index
    %c32 = arith.constant 32 : index
    %111 = vector.load %arg8[%c0_52, %c32] : memref<8x96xf32, #tpu.memory_space<vmem>>, vector<8x8xf32>
    tpu.vector_store %arg8[%c0_52, %c32], %110 {strides = array<i32>} : memref<8x96xf32, #tpu.memory_space<vmem>>, vector<8x8xf32>,
    %112 = vector.extract_strided_slice %6 {offsets = [0, 40], sizes = [8, 8], strides = [1, 1]} : vector<8x288xf32> to vector<8x8xf32>
    %113 = vector.extract_strided_slice %6 {offsets = [0, 136], sizes = [8, 8], strides = [1, 1]} : vector<8x288xf32> to vector<8x8xf32>
    %114 = vector.extract_strided_slice %6 {offsets = [0, 232], sizes = [8, 8], strides = [1, 1]} : vector<8x288xf32> to vector<8x8xf32>
    %cst_53 = arith.constant dense<0.000000e+00> : vector<8x8xf32>
    %115 = tpu.matmul %112, %113, %cst_53 {dimension_numbers = #tpu.dot_dimension_numbers<[1], [1], [0], [0], [0, 0, 1, 0], [], []>} : vector<8x8xf32>, vector<8x8xf32>, vector<8x8xf32> -> vector<8x8xf32>
    %cst_54 = arith.constant 0.353553385 : f32
    %116 = vector.broadcast %cst_54 : f32 to vector<8x8xf32>
    %117 = arith.mulf %115, %116 : vector<8x8xf32>
    %cst_55 = arith.constant dense<0xFF800000> : vector<8xf32>
    %118 = vector.multi_reduction <maximumf>, %117, %cst_55 [1] : vector<8x8xf32> to vector<8xf32>
    %119 = vector.shape_cast %118 : vector<8xf32> to vector<8x1xf32>
    %120 = vector.broadcast %119 : vector<8x1xf32> to vector<8x8xf32>
    %121 = arith.subf %117, %120 : vector<8x8xf32>
    %122 = math.exp %121 : vector<8x8xf32>
    %cst_56 = arith.constant dense<0.000000e+00> : vector<8xf32>
    %123 = vector.multi_reduction <add>, %122, %cst_56 [1] : vector<8x8xf32> to vector<8xf32>
    %124 = vector.shape_cast %123 : vector<8xf32> to vector<8x1xf32>
    %125 = tpu.reciprocal %124 {approx = true} : vector<8x1xf32> -> vector<8x1xf32>
    %126 = vector.broadcast %125 : vector<8x1xf32> to vector<8x8xf32>
    %127 = arith.mulf %122, %126 : vector<8x8xf32>
    %c0_57 = arith.constant 0 : index
    %c5 = arith.constant 5 : index
    %c0_58 = arith.constant 0 : index
    %c0_59 = arith.constant 0 : index
    %128 = vector.load %arg7[%c0_57, %c5, %c0_58, %c0_59] : memref<1x12x8x8xf32, #tpu.memory_space<vmem>>, vector<1x1x8x8xf32>
    %129 = vector.shape_cast %128 : vector<1x1x8x8xf32> to vector<8x8xf32>
    %130 = vector.shape_cast %127 : vector<8x8xf32> to vector<1x1x8x8xf32>
    tpu.vector_store %arg7[%c0_57, %c5, %c0_58, %c0_59], %130 {strides = array<i32>} : memref<1x12x8x8xf32, #tpu.memory_space<vmem>>, vector<1x1x8x8xf32>,
    %cst_60 = arith.constant dense<0.000000e+00> : vector<8x8xf32>
    %131 = tpu.matmul %127, %114, %cst_60 {dimension_numbers = #tpu.dot_dimension_numbers<[1], [0], [0], [1], [0, 0, 1, 1], [], []>} : vector<8x8xf32>, vector<8x8xf32>, vector<8x8xf32> -> vector<8x8xf32>
    %c0_61 = arith.constant 0 : index
    %c40 = arith.constant 40 : index
    %132 = vector.load %arg8[%c0_61, %c40] : memref<8x96xf32, #tpu.memory_space<vmem>>, vector<8x8xf32>
    tpu.vector_store %arg8[%c0_61, %c40], %131 {strides = array<i32>} : memref<8x96xf32, #tpu.memory_space<vmem>>, vector<8x8xf32>,
    %133 = vector.extract_strided_slice %6 {offsets = [0, 48], sizes = [8, 8], strides = [1, 1]} : vector<8x288xf32> to vector<8x8xf32>
    %134 = vector.extract_strided_slice %6 {offsets = [0, 144], sizes = [8, 8], strides = [1, 1]} : vector<8x288xf32> to vector<8x8xf32>
    %135 = vector.extract_strided_slice %6 {offsets = [0, 240], sizes = [8, 8], strides = [1, 1]} : vector<8x288xf32> to vector<8x8xf32>
    %cst_62 = arith.constant dense<0.000000e+00> : vector<8x8xf32>
    %136 = tpu.matmul %133, %134, %cst_62 {dimension_numbers = #tpu.dot_dimension_numbers<[1], [1], [0], [0], [0, 0, 1, 0], [], []>} : vector<8x8xf32>, vector<8x8xf32>, vector<8x8xf32> -> vector<8x8xf32>
    %cst_63 = arith.constant 0.353553385 : f32
    %137 = vector.broadcast %cst_63 : f32 to vector<8x8xf32>
    %138 = arith.mulf %136, %137 : vector<8x8xf32>
    %cst_64 = arith.constant dense<0xFF800000> : vector<8xf32>
    %139 = vector.multi_reduction <maximumf>, %138, %cst_64 [1] : vector<8x8xf32> to vector<8xf32>
    %140 = vector.shape_cast %139 : vector<8xf32> to vector<8x1xf32>
    %141 = vector.broadcast %140 : vector<8x1xf32> to vector<8x8xf32>
    %142 = arith.subf %138, %141 : vector<8x8xf32>
    %143 = math.exp %142 : vector<8x8xf32>
    %cst_65 = arith.constant dense<0.000000e+00> : vector<8xf32>
    %144 = vector.multi_reduction <add>, %143, %cst_65 [1] : vector<8x8xf32> to vector<8xf32>
    %145 = vector.shape_cast %144 : vector<8xf32> to vector<8x1xf32>
    %146 = tpu.reciprocal %145 {approx = true} : vector<8x1xf32> -> vector<8x1xf32>
    %147 = vector.broadcast %146 : vector<8x1xf32> to vector<8x8xf32>
    %148 = arith.mulf %143, %147 : vector<8x8xf32>
    %c0_66 = arith.constant 0 : index
    %c6 = arith.constant 6 : index
    %c0_67 = arith.constant 0 : index
    %c0_68 = arith.constant 0 : index
    %149 = vector.load %arg7[%c0_66, %c6, %c0_67, %c0_68] : memref<1x12x8x8xf32, #tpu.memory_space<vmem>>, vector<1x1x8x8xf32>
    %150 = vector.shape_cast %149 : vector<1x1x8x8xf32> to vector<8x8xf32>
    %151 = vector.shape_cast %148 : vector<8x8xf32> to vector<1x1x8x8xf32>
    tpu.vector_store %arg7[%c0_66, %c6, %c0_67, %c0_68], %151 {strides = array<i32>} : memref<1x12x8x8xf32, #tpu.memory_space<vmem>>, vector<1x1x8x8xf32>,
    %cst_69 = arith.constant dense<0.000000e+00> : vector<8x8xf32>
    %152 = tpu.matmul %148, %135, %cst_69 {dimension_numbers = #tpu.dot_dimension_numbers<[1], [0], [0], [1], [0, 0, 1, 1], [], []>} : vector<8x8xf32>, vector<8x8xf32>, vector<8x8xf32> -> vector<8x8xf32>
    %c0_70 = arith.constant 0 : index
    %c48 = arith.constant 48 : index
    %153 = vector.load %arg8[%c0_70, %c48] : memref<8x96xf32, #tpu.memory_space<vmem>>, vector<8x8xf32>
    tpu.vector_store %arg8[%c0_70, %c48], %152 {strides = array<i32>} : memref<8x96xf32, #tpu.memory_space<vmem>>, vector<8x8xf32>,
    %154 = vector.extract_strided_slice %6 {offsets = [0, 56], sizes = [8, 8], strides = [1, 1]} : vector<8x288xf32> to vector<8x8xf32>
    %155 = vector.extract_strided_slice %6 {offsets = [0, 152], sizes = [8, 8], strides = [1, 1]} : vector<8x288xf32> to vector<8x8xf32>
    %156 = vector.extract_strided_slice %6 {offsets = [0, 248], sizes = [8, 8], strides = [1, 1]} : vector<8x288xf32> to vector<8x8xf32>
    %cst_71 = arith.constant dense<0.000000e+00> : vector<8x8xf32>
    %157 = tpu.matmul %154, %155, %cst_71 {dimension_numbers = #tpu.dot_dimension_numbers<[1], [1], [0], [0], [0, 0, 1, 0], [], []>} : vector<8x8xf32>, vector<8x8xf32>, vector<8x8xf32> -> vector<8x8xf32>
    %cst_72 = arith.constant 0.353553385 : f32
    %158 = vector.broadcast %cst_72 : f32 to vector<8x8xf32>
    %159 = arith.mulf %157, %158 : vector<8x8xf32>
    %cst_73 = arith.constant dense<0xFF800000> : vector<8xf32>
    %160 = vector.multi_reduction <maximumf>, %159, %cst_73 [1] : vector<8x8xf32> to vector<8xf32>
    %161 = vector.shape_cast %160 : vector<8xf32> to vector<8x1xf32>
    %162 = vector.broadcast %161 : vector<8x1xf32> to vector<8x8xf32>
    %163 = arith.subf %159, %162 : vector<8x8xf32>
    %164 = math.exp %163 : vector<8x8xf32>
    %cst_74 = arith.constant dense<0.000000e+00> : vector<8xf32>
    %165 = vector.multi_reduction <add>, %164, %cst_74 [1] : vector<8x8xf32> to vector<8xf32>
    %166 = vector.shape_cast %165 : vector<8xf32> to vector<8x1xf32>
    %167 = tpu.reciprocal %166 {approx = true} : vector<8x1xf32> -> vector<8x1xf32>
    %168 = vector.broadcast %167 : vector<8x1xf32> to vector<8x8xf32>
    %169 = arith.mulf %164, %168 : vector<8x8xf32>
    %c0_75 = arith.constant 0 : index
    %c7 = arith.constant 7 : index
    %c0_76 = arith.constant 0 : index
    %c0_77 = arith.constant 0 : index
    %170 = vector.load %arg7[%c0_75, %c7, %c0_76, %c0_77] : memref<1x12x8x8xf32, #tpu.memory_space<vmem>>, vector<1x1x8x8xf32>
    %171 = vector.shape_cast %170 : vector<1x1x8x8xf32> to vector<8x8xf32>
    %172 = vector.shape_cast %169 : vector<8x8xf32> to vector<1x1x8x8xf32>
    tpu.vector_store %arg7[%c0_75, %c7, %c0_76, %c0_77], %172 {strides = array<i32>} : memref<1x12x8x8xf32, #tpu.memory_space<vmem>>, vector<1x1x8x8xf32>,
    %cst_78 = arith.constant dense<0.000000e+00> : vector<8x8xf32>
    %173 = tpu.matmul %169, %156, %cst_78 {dimension_numbers = #tpu.dot_dimension_numbers<[1], [0], [0], [1], [0, 0, 1, 1], [], []>} : vector<8x8xf32>, vector<8x8xf32>, vector<8x8xf32> -> vector<8x8xf32>
    %c0_79 = arith.constant 0 : index
    %c56 = arith.constant 56 : index
    %174 = vector.load %arg8[%c0_79, %c56] : memref<8x96xf32, #tpu.memory_space<vmem>>, vector<8x8xf32>
    tpu.vector_store %arg8[%c0_79, %c56], %173 {strides = array<i32>} : memref<8x96xf32, #tpu.memory_space<vmem>>, vector<8x8xf32>,
    %175 = vector.extract_strided_slice %6 {offsets = [0, 64], sizes = [8, 8], strides = [1, 1]} : vector<8x288xf32> to vector<8x8xf32>
    %176 = vector.extract_strided_slice %6 {offsets = [0, 160], sizes = [8, 8], strides = [1, 1]} : vector<8x288xf32> to vector<8x8xf32>
    %177 = vector.extract_strided_slice %6 {offsets = [0, 256], sizes = [8, 8], strides = [1, 1]} : vector<8x288xf32> to vector<8x8xf32>
    %cst_80 = arith.constant dense<0.000000e+00> : vector<8x8xf32>
    %178 = tpu.matmul %175, %176, %cst_80 {dimension_numbers = #tpu.dot_dimension_numbers<[1], [1], [0], [0], [0, 0, 1, 0], [], []>} : vector<8x8xf32>, vector<8x8xf32>, vector<8x8xf32> -> vector<8x8xf32>
    %cst_81 = arith.constant 0.353553385 : f32
    %179 = vector.broadcast %cst_81 : f32 to vector<8x8xf32>
    %180 = arith.mulf %178, %179 : vector<8x8xf32>
    %cst_82 = arith.constant dense<0xFF800000> : vector<8xf32>
    %181 = vector.multi_reduction <maximumf>, %180, %cst_82 [1] : vector<8x8xf32> to vector<8xf32>
    %182 = vector.shape_cast %181 : vector<8xf32> to vector<8x1xf32>
    %183 = vector.broadcast %182 : vector<8x1xf32> to vector<8x8xf32>
    %184 = arith.subf %180, %183 : vector<8x8xf32>
    %185 = math.exp %184 : vector<8x8xf32>
    %cst_83 = arith.constant dense<0.000000e+00> : vector<8xf32>
    %186 = vector.multi_reduction <add>, %185, %cst_83 [1] : vector<8x8xf32> to vector<8xf32>
    %187 = vector.shape_cast %186 : vector<8xf32> to vector<8x1xf32>
    %188 = tpu.reciprocal %187 {approx = true} : vector<8x1xf32> -> vector<8x1xf32>
    %189 = vector.broadcast %188 : vector<8x1xf32> to vector<8x8xf32>
    %190 = arith.mulf %185, %189 : vector<8x8xf32>
    %c0_84 = arith.constant 0 : index
    %c8_85 = arith.constant 8 : index
    %c0_86 = arith.constant 0 : index
    %c0_87 = arith.constant 0 : index
    %191 = vector.load %arg7[%c0_84, %c8_85, %c0_86, %c0_87] : memref<1x12x8x8xf32, #tpu.memory_space<vmem>>, vector<1x1x8x8xf32>
    %192 = vector.shape_cast %191 : vector<1x1x8x8xf32> to vector<8x8xf32>
    %193 = vector.shape_cast %190 : vector<8x8xf32> to vector<1x1x8x8xf32>
    tpu.vector_store %arg7[%c0_84, %c8_85, %c0_86, %c0_87], %193 {strides = array<i32>} : memref<1x12x8x8xf32, #tpu.memory_space<vmem>>, vector<1x1x8x8xf32>,
    %cst_88 = arith.constant dense<0.000000e+00> : vector<8x8xf32>
    %194 = tpu.matmul %190, %177, %cst_88 {dimension_numbers = #tpu.dot_dimension_numbers<[1], [0], [0], [1], [0, 0, 1, 1], [], []>} : vector<8x8xf32>, vector<8x8xf32>, vector<8x8xf32> -> vector<8x8xf32>
    %c0_89 = arith.constant 0 : index
    %c64 = arith.constant 64 : index
    %195 = vector.load %arg8[%c0_89, %c64] : memref<8x96xf32, #tpu.memory_space<vmem>>, vector<8x8xf32>
    tpu.vector_store %arg8[%c0_89, %c64], %194 {strides = array<i32>} : memref<8x96xf32, #tpu.memory_space<vmem>>, vector<8x8xf32>,
    %196 = vector.extract_strided_slice %6 {offsets = [0, 72], sizes = [8, 8], strides = [1, 1]} : vector<8x288xf32> to vector<8x8xf32>
    %197 = vector.extract_strided_slice %6 {offsets = [0, 168], sizes = [8, 8], strides = [1, 1]} : vector<8x288xf32> to vector<8x8xf32>
    %198 = vector.extract_strided_slice %6 {offsets = [0, 264], sizes = [8, 8], strides = [1, 1]} : vector<8x288xf32> to vector<8x8xf32>
    %cst_90 = arith.constant dense<0.000000e+00> : vector<8x8xf32>
    %199 = tpu.matmul %196, %197, %cst_90 {dimension_numbers = #tpu.dot_dimension_numbers<[1], [1], [0], [0], [0, 0, 1, 0], [], []>} : vector<8x8xf32>, vector<8x8xf32>, vector<8x8xf32> -> vector<8x8xf32>
    %cst_91 = arith.constant 0.353553385 : f32
    %200 = vector.broadcast %cst_91 : f32 to vector<8x8xf32>
    %201 = arith.mulf %199, %200 : vector<8x8xf32>
    %cst_92 = arith.constant dense<0xFF800000> : vector<8xf32>
    %202 = vector.multi_reduction <maximumf>, %201, %cst_92 [1] : vector<8x8xf32> to vector<8xf32>
    %203 = vector.shape_cast %202 : vector<8xf32> to vector<8x1xf32>
    %204 = vector.broadcast %203 : vector<8x1xf32> to vector<8x8xf32>
    %205 = arith.subf %201, %204 : vector<8x8xf32>
    %206 = math.exp %205 : vector<8x8xf32>
    %cst_93 = arith.constant dense<0.000000e+00> : vector<8xf32>
    %207 = vector.multi_reduction <add>, %206, %cst_93 [1] : vector<8x8xf32> to vector<8xf32>
    %208 = vector.shape_cast %207 : vector<8xf32> to vector<8x1xf32>
    %209 = tpu.reciprocal %208 {approx = true} : vector<8x1xf32> -> vector<8x1xf32>
    %210 = vector.broadcast %209 : vector<8x1xf32> to vector<8x8xf32>
    %211 = arith.mulf %206, %210 : vector<8x8xf32>
    %c0_94 = arith.constant 0 : index
    %c9 = arith.constant 9 : index
    %c0_95 = arith.constant 0 : index
    %c0_96 = arith.constant 0 : index
    %212 = vector.load %arg7[%c0_94, %c9, %c0_95, %c0_96] : memref<1x12x8x8xf32, #tpu.memory_space<vmem>>, vector<1x1x8x8xf32>
    %213 = vector.shape_cast %212 : vector<1x1x8x8xf32> to vector<8x8xf32>
    %214 = vector.shape_cast %211 : vector<8x8xf32> to vector<1x1x8x8xf32>
    tpu.vector_store %arg7[%c0_94, %c9, %c0_95, %c0_96], %214 {strides = array<i32>} : memref<1x12x8x8xf32, #tpu.memory_space<vmem>>, vector<1x1x8x8xf32>,
    %cst_97 = arith.constant dense<0.000000e+00> : vector<8x8xf32>
    %215 = tpu.matmul %211, %198, %cst_97 {dimension_numbers = #tpu.dot_dimension_numbers<[1], [0], [0], [1], [0, 0, 1, 1], [], []>} : vector<8x8xf32>, vector<8x8xf32>, vector<8x8xf32> -> vector<8x8xf32>
    %c0_98 = arith.constant 0 : index
    %c72 = arith.constant 72 : index
    %216 = vector.load %arg8[%c0_98, %c72] : memref<8x96xf32, #tpu.memory_space<vmem>>, vector<8x8xf32>
    tpu.vector_store %arg8[%c0_98, %c72], %215 {strides = array<i32>} : memref<8x96xf32, #tpu.memory_space<vmem>>, vector<8x8xf32>,
    %217 = vector.extract_strided_slice %6 {offsets = [0, 80], sizes = [8, 8], strides = [1, 1]} : vector<8x288xf32> to vector<8x8xf32>
    %218 = vector.extract_strided_slice %6 {offsets = [0, 176], sizes = [8, 8], strides = [1, 1]} : vector<8x288xf32> to vector<8x8xf32>
    %219 = vector.extract_strided_slice %6 {offsets = [0, 272], sizes = [8, 8], strides = [1, 1]} : vector<8x288xf32> to vector<8x8xf32>
    %cst_99 = arith.constant dense<0.000000e+00> : vector<8x8xf32>
    %220 = tpu.matmul %217, %218, %cst_99 {dimension_numbers = #tpu.dot_dimension_numbers<[1], [1], [0], [0], [0, 0, 1, 0], [], []>} : vector<8x8xf32>, vector<8x8xf32>, vector<8x8xf32> -> vector<8x8xf32>
    %cst_100 = arith.constant 0.353553385 : f32
    %221 = vector.broadcast %cst_100 : f32 to vector<8x8xf32>
    %222 = arith.mulf %220, %221 : vector<8x8xf32>
    %cst_101 = arith.constant dense<0xFF800000> : vector<8xf32>
    %223 = vector.multi_reduction <maximumf>, %222, %cst_101 [1] : vector<8x8xf32> to vector<8xf32>
    %224 = vector.shape_cast %223 : vector<8xf32> to vector<8x1xf32>
    %225 = vector.broadcast %224 : vector<8x1xf32> to vector<8x8xf32>
    %226 = arith.subf %222, %225 : vector<8x8xf32>
    %227 = math.exp %226 : vector<8x8xf32>
    %cst_102 = arith.constant dense<0.000000e+00> : vector<8xf32>
    %228 = vector.multi_reduction <add>, %227, %cst_102 [1] : vector<8x8xf32> to vector<8xf32>
    %229 = vector.shape_cast %228 : vector<8xf32> to vector<8x1xf32>
    %230 = tpu.reciprocal %229 {approx = true} : vector<8x1xf32> -> vector<8x1xf32>
    %231 = vector.broadcast %230 : vector<8x1xf32> to vector<8x8xf32>
    %232 = arith.mulf %227, %231 : vector<8x8xf32>
    %c0_103 = arith.constant 0 : index
    %c10 = arith.constant 10 : index
    %c0_104 = arith.constant 0 : index
    %c0_105 = arith.constant 0 : index
    %233 = vector.load %arg7[%c0_103, %c10, %c0_104, %c0_105] : memref<1x12x8x8xf32, #tpu.memory_space<vmem>>, vector<1x1x8x8xf32>
    %234 = vector.shape_cast %233 : vector<1x1x8x8xf32> to vector<8x8xf32>
    %235 = vector.shape_cast %232 : vector<8x8xf32> to vector<1x1x8x8xf32>
    tpu.vector_store %arg7[%c0_103, %c10, %c0_104, %c0_105], %235 {strides = array<i32>} : memref<1x12x8x8xf32, #tpu.memory_space<vmem>>, vector<1x1x8x8xf32>,
    %cst_106 = arith.constant dense<0.000000e+00> : vector<8x8xf32>
    %236 = tpu.matmul %232, %219, %cst_106 {dimension_numbers = #tpu.dot_dimension_numbers<[1], [0], [0], [1], [0, 0, 1, 1], [], []>} : vector<8x8xf32>, vector<8x8xf32>, vector<8x8xf32> -> vector<8x8xf32>
    %c0_107 = arith.constant 0 : index
    %c80 = arith.constant 80 : index
    %237 = vector.load %arg8[%c0_107, %c80] : memref<8x96xf32, #tpu.memory_space<vmem>>, vector<8x8xf32>
    tpu.vector_store %arg8[%c0_107, %c80], %236 {strides = array<i32>} : memref<8x96xf32, #tpu.memory_space<vmem>>, vector<8x8xf32>,
    %238 = vector.extract_strided_slice %6 {offsets = [0, 88], sizes = [8, 8], strides = [1, 1]} : vector<8x288xf32> to vector<8x8xf32>
    %239 = vector.extract_strided_slice %6 {offsets = [0, 184], sizes = [8, 8], strides = [1, 1]} : vector<8x288xf32> to vector<8x8xf32>
    %240 = vector.extract_strided_slice %6 {offsets = [0, 280], sizes = [8, 8], strides = [1, 1]} : vector<8x288xf32> to vector<8x8xf32>
    %cst_108 = arith.constant dense<0.000000e+00> : vector<8x8xf32>
    %241 = tpu.matmul %238, %239, %cst_108 {dimension_numbers = #tpu.dot_dimension_numbers<[1], [1], [0], [0], [0, 0, 1, 0], [], []>} : vector<8x8xf32>, vector<8x8xf32>, vector<8x8xf32> -> vector<8x8xf32>
    %cst_109 = arith.constant 0.353553385 : f32
    %242 = vector.broadcast %cst_109 : f32 to vector<8x8xf32>
    %243 = arith.mulf %241, %242 : vector<8x8xf32>
    %cst_110 = arith.constant dense<0xFF800000> : vector<8xf32>
    %244 = vector.multi_reduction <maximumf>, %243, %cst_110 [1] : vector<8x8xf32> to vector<8xf32>
    %245 = vector.shape_cast %244 : vector<8xf32> to vector<8x1xf32>
    %246 = vector.broadcast %245 : vector<8x1xf32> to vector<8x8xf32>
    %247 = arith.subf %243, %246 : vector<8x8xf32>
    %248 = math.exp %247 : vector<8x8xf32>
    %cst_111 = arith.constant dense<0.000000e+00> : vector<8xf32>
    %249 = vector.multi_reduction <add>, %248, %cst_111 [1] : vector<8x8xf32> to vector<8xf32>
    %250 = vector.shape_cast %249 : vector<8xf32> to vector<8x1xf32>
    %251 = tpu.reciprocal %250 {approx = true} : vector<8x1xf32> -> vector<8x1xf32>
    %252 = vector.broadcast %251 : vector<8x1xf32> to vector<8x8xf32>
    %253 = arith.mulf %248, %252 : vector<8x8xf32>
    %c0_112 = arith.constant 0 : index
    %c11 = arith.constant 11 : index
    %c0_113 = arith.constant 0 : index
    %c0_114 = arith.constant 0 : index
    %254 = vector.load %arg7[%c0_112, %c11, %c0_113, %c0_114] : memref<1x12x8x8xf32, #tpu.memory_space<vmem>>, vector<1x1x8x8xf32>
    %255 = vector.shape_cast %254 : vector<1x1x8x8xf32> to vector<8x8xf32>
    %256 = vector.shape_cast %253 : vector<8x8xf32> to vector<1x1x8x8xf32>
    tpu.vector_store %arg7[%c0_112, %c11, %c0_113, %c0_114], %256 {strides = array<i32>} : memref<1x12x8x8xf32, #tpu.memory_space<vmem>>, vector<1x1x8x8xf32>,
    %cst_115 = arith.constant dense<0.000000e+00> : vector<8x8xf32>
    %257 = tpu.matmul %253, %240, %cst_115 {dimension_numbers = #tpu.dot_dimension_numbers<[1], [0], [0], [1], [0, 0, 1, 1], [], []>} : vector<8x8xf32>, vector<8x8xf32>, vector<8x8xf32> -> vector<8x8xf32>
    %c0_116 = arith.constant 0 : index
    %c88 = arith.constant 88 : index
    %258 = vector.load %arg8[%c0_116, %c88] : memref<8x96xf32, #tpu.memory_space<vmem>>, vector<8x8xf32>
    tpu.vector_store %arg8[%c0_116, %c88], %257 {strides = array<i32>} : memref<8x96xf32, #tpu.memory_space<vmem>>, vector<8x8xf32>,
    %c0_117 = arith.constant 0 : index
    %c0_118 = arith.constant 0 : index
    %259 = vector.load %arg8[%c0_117, %c0_118] : memref<8x96xf32, #tpu.memory_space<vmem>>, vector<8x96xf32>
    %c0_119 = arith.constant 0 : index
    %c0_120 = arith.constant 0 : index
    %260 = vector.load %arg4[%c0_119, %c0_120] : memref<96x96xf32, #tpu.memory_space<vmem>>, vector<96x96xf32>
    %cst_121 = arith.constant dense<0.000000e+00> : vector<8x96xf32>
    %261 = tpu.matmul %259, %260, %cst_121 {dimension_numbers = #tpu.dot_dimension_numbers<[1], [1], [0], [0], [0, 0, 1, 0], [], []>} : vector<8x96xf32>, vector<96x96xf32>, vector<8x96xf32> -> vector<8x96xf32>
    %c0_122 = arith.constant 0 : index
    %c0_123 = arith.constant 0 : index
    %262 = vector.load %arg5[%c0_122, %c0_123] : memref<1x96xf32, #tpu.memory_space<vmem>>, vector<1x96xf32>
    %263 = vector.broadcast %262 : vector<1x96xf32> to vector<8x96xf32>
    %264 = arith.addf %261, %263 : vector<8x96xf32>
    %c0_124 = arith.constant 0 : index
    %c0_125 = arith.constant 0 : index
    %c0_126 = arith.constant 0 : index
    %265 = vector.load %arg6[%c0_124, %c0_125, %c0_126] : memref<1x8x96xf32, #tpu.memory_space<vmem>>, vector<1x8x96xf32>
    %266 = vector.shape_cast %265 : vector<1x8x96xf32> to vector<8x96xf32>
    %267 = vector.shape_cast %264 : vector<8x96xf32> to vector<1x8x96xf32>
    tpu.vector_store %arg6[%c0_124, %c0_125, %c0_126], %267 {strides = array<i32>} : memref<1x8x96xf32, #tpu.memory_space<vmem>>, vector<1x8x96xf32>,
    return
  }
  func.func @transform_0(%arg0: i32) -> (i32, i32, i32) {
    %c0_i32 = arith.constant 0 : i32
    %c0_i32_0 = arith.constant 0 : i32
    %c0_i32_1 = arith.constant 0 : i32
    return %arg0, %c0_i32, %c0_i32_0 : i32, i32, i32
  }
  func.func @transform_1(%arg0: i32) -> (i32, i32) {
    %c0_i32 = arith.constant 0 : i32
    %c0_i32_0 = arith.constant 0 : i32
    %c0_i32_1 = arith.constant 0 : i32
    return %c0_i32, %c0_i32_0 : i32, i32
  }
  func.func @transform_2(%arg0: i32) -> (i32, i32) {
    %c0_i32 = arith.constant 0 : i32
    %c0_i32_0 = arith.constant 0 : i32
    %c0_i32_1 = arith.constant 0 : i32
    return %c0_i32, %c0_i32_0 : i32, i32
  }
  func.func @transform_3(%arg0: i32) -> (i32, i32) {
    %c0_i32 = arith.constant 0 : i32
    %c0_i32_0 = arith.constant 0 : i32
    %c0_i32_1 = arith.constant 0 : i32
    return %c0_i32, %c0_i32_0 : i32, i32
  }
  func.func @transform_4(%arg0: i32) -> (i32, i32) {
    %c0_i32 = arith.constant 0 : i32
    %c0_i32_0 = arith.constant 0 : i32
    %c0_i32_1 = arith.constant 0 : i32
    return %c0_i32, %c0_i32_0 : i32, i32
  }
  func.func @transform_5(%arg0: i32) -> (i32, i32, i32) {
    %c0_i32 = arith.constant 0 : i32
    %c0_i32_0 = arith.constant 0 : i32
    %c0_i32_1 = arith.constant 0 : i32
    return %arg0, %c0_i32, %c0_i32_0 : i32, i32, i32
  }
  func.func @transform_6(%arg0: i32) -> (i32, i32, i32, i32) {
    %c0_i32 = arith.constant 0 : i32
    %c0_i32_0 = arith.constant 0 : i32
    %c0_i32_1 = arith.constant 0 : i32
    %c0_i32_2 = arith.constant 0 : i32
    return %arg0, %c0_i32, %c0_i32_0, %c0_i32_1 : i32, i32, i32, i32
  }
}

</mosaic_0001>

<bundles_post_ra>
// kernel: attention_forward.1
= control target key start
LH: loop header
LB: loop body
LE: loop exit
PB: predicated region body
PF: predicated region fallthrough
CT: control target
= control target key end

     0   :  { %12 = vsyncpa [#allocation4], 0  ;;  %s4080_s0 = inlined_call_operand.vmem [shape: f32[2,8,96], index: 0, kind: input, shape index: {}]   ;;  %s4081_s1 = inlined_call_operand.vmem [shape: f32[288,96], index: 1, kind: input, shape index: {}]   ;;  %s4082_s2 = inlined_call_operand.vmem [shape: f32[1,288], index: 2, kind: input, shape index: {}]   ;;  %s4083_s3 = inlined_call_operand.vmem [shape: f32[96,96], index: 3, kind: input, shape index: {}]   ;;  %s4084_s4 = inlined_call_operand.vmem [shape: f32[1,96], index: 4, kind: input, shape index: {}]   ;;  %s4085_s5 = inlined_call_operand.hbm [shape: f32[2,8,96], index: 5, kind: output, shape index: {0}]   ;;  %s4086_s6 = inlined_call_operand.vmem [shape: f32[2,12,8,8], index: 6, kind: output, shape index: {1}]  }
   0x1   :  { %14 = vsyncpa [#allocation4 + $0x1], 0  ;;  %s3470_s21 = smov 0   ;;  %s3472_s22 = smov 0  }
   0x2   :  { %s3474_s23 = smov 0   ;;  %s3476_s24 = smov 0  }
   0x3 LB: > { %s3491_s25 = sadd.s32 4294967295, %s3415_s24   ;;  %s2882_s26 = sadd.s32 4294967294, %s3415_s24   ;;  %s3415_s24 = sphi %s3476_s24, %s4094_s24   ;;  %s3411_s23 = sphi %s3474_s23, %s4093_s23   ;;  %s3407_s22 = sphi %s3472_s22, %s4092_s22   ;;  %s3403_s21 = sphi %s3470_s21, %s4091_s21  }
   0x4   : > { %s3495_s27 = sadd.s32 1, %s3415_s24   ;;  %s137_s28 = sadd.s32 1, %s3411_s23 }
   0x5   : > { %s134_s29 = ssub.s32 %s3415_s24, %s3495_s27  ;;  %p147_p0 = scmp.ne.s32.totalorder %s3411_s23, %s3407_s22 }
   0x6   : > { %p135_p1 = scmp.eq.s32.totalorder %s134_s29, 0  ;;  %p148_p2 = scmp.eq.s32.totalorder %s3491_s25, 1 }
   0x7   : > { %p153_p3 = scmp.ne.s32.totalorder %s3407_s22, %s3403_s21  ;;  %p154_p4 = scmp.eq.s32.totalorder %s2882_s26, 1 }
   0x8   : > { %s3506_s30 = scalar_select %p135_p1, %s3411_s23, %s137_s28  }
   0x9   : > { %p3508_p5 = por %p148_p2, %p147_p0  ;;  %p3512_p6 = por %p154_p4, %p153_p3 }
   0xa   : > { %p2885_p7 = scmp.ge.s32.totalorder %s3415_s24, 1  ;;  %p217_p8 = scmp.lt.s32.totalorder %s3415_s24, 3 }
   0xc   : > { %p218_p9 = pnand %p2885_p7, %p217_p8 }
   0xd   : > { %p251_p10 = scmp.lt.s32.totalorder (!%p218_p9), %s3491_s25, 1  ;;  %s4087_s18 = smov (!%p218_p9), 32  }
   0xe   : > { %221 = sbr.rel (%p218_p9) target bundleno = 7049 (0x1b89), region = 40  ;;  %s3420_s19 = smov (!%p218_p9), 64  }
   0xf   : > { %s3422_s26 = smov (!%p218_p9), 56   ;;  %s3423_s28 = smov (!%p218_p9), 120  }
  0x10   : > { %s3425_s12 = smov (!%p218_p9), 112   ;;  %s3426_s13 = smov (!%p218_p9), 48  }
  0x11   : > { %s3427_s14 = smov (!%p218_p9), 8   ;;  %s3428_s16 = smov (!%p218_p9), 104  }
  0x12   : > { %s3429_s17 = smov (!%p218_p9), 40   ;;  %s3431_s9 = smov (!%p218_p9), 88  }
  0x13   : > { %v292_v0 = vld [vmem:[%s4081_s1 + $0xf8] sm:$0xff]  ;;  %vm314_vm0 = vcmask 785408   ;;  %v291_v2 = vld [vmem:[%s4081_s1 + $0xf0] sm:$0xff]  ;;  %s3531_s15 = scalar_select %p251_p10, %s3491_s25, 1  ;;  %v290_v4 = vld [vmem:[%s4081_s1 + $0xe8] sm:$0xff]  ;;  %v3417_v34 = vmov 0.0   ;;  %v299_v38 = vlaneseq }
  0x14   : > { %v276_v1 = vld [vmem:[%s4081_s1 + $0x78] sm:$0xff]  ;;  %2992 = vmatprep.subr.msk.mxu0 %vm314_vm0, %v292_v0  ;;  %v275_v3 = vld [vmem:[%s4081_s1 + $0x70] sm:$0xff]  ;;  %v274_v5 = vld [vmem:[%s4081_s1 + $0x68] sm:$0xff]  ;;  %3092 = vmatprep.subr.mxu1 %v3417_v34  ;;  %vm3418_vm1 = vmmov 0   ;;  %vm570_vm2 = vcmask 64512   ;;  %vm908_vm3 = vcmask 130112  }
  0x15   : > { %2993 = vmatpush3.xpose.msk.msra.mxu0 %vm314_vm0, %v276_v1  ;;  %s2887_s20 = sshll.u32 %s3531_s15, 3  ;;  %v289_v6 = vld [vmem:[%s4081_s1 + $0xe0] sm:$0xff]  ;;  %v288_v9 = vld [vmem:[%s4081_s1 + $0xd8] sm:$0xff]  ;;  %v287_v11 = vld [vmem:[%s4081_s1 + $0xd0] sm:$0xff]  ;;  %3100 = vmatprep.mubr.msk.f32.mxu1 %vm3418_vm1, %v3417_v34  ;;  %v3690_v39 = vshrl.u32 %v299_v38, 7  ;;  %s3250_s29 = smul.u32 96, %s3531_s15 }
  0x16   : > { %2994 = vmatprep.subr.msk.mxu0 %vm314_vm0, %v291_v2  ;;  %s254_s10 = scalar_lea.vmem %s4080_s0, %s2887_s20  ;;  %v273_v8 = vld [vmem:[%s4081_s1 + $0x60] sm:$0xff]  ;;  %v272_v10 = vld [vmem:[%s4081_s1 + $0x58] sm:$0xff]  ;;  %v271_v12 = vld [vmem:[%s4081_s1 + $0x50] sm:$0xff]  ;;  %s3421_s20 = smov 24   ;;  %vm1082_vm4 = vcmask 195712   ;;  %vm1256_vm5 = vcmask 261312  }
  0x17   : > { %v3553_v7 = vld [vmem:[%s254_s10] sm:$0xff]  ;;  %v286_v13 = vld [vmem:[%s4081_s1 + $0xc8] sm:$0xff]  ;;  %v284_v17 = vld [vmem:[%s4081_s1 + $0xb8] sm:$0xff]  ;;  %v301_v40 = vsub.s32 0, %v3690_v39  ;;  %v305_v42 = vsub.s32 1, %v3690_v39  ;;  %s3730_s11 = scalar_lea.vmem %s4086_s6, %s3250_s29  ;;  %s3424_s15 = smov 16  }
  0x18   : > { %3024 = vmatprep.mubr.msk.f32.mxu0 %vm314_vm0, %v3553_v7  ;;  %v270_v14 = vld [vmem:[%s4081_s1 + $0x48] sm:$0xff]  ;;  %v285_v15 = vld [vmem:[%s4081_s1 + $0xc0] sm:$0xff]  ;;  %v268_v18 = vld [vmem:[%s4081_s1 + $0x38] sm:$0xff]  ;;  %s3430_s29 = smov 96   ;;  %s3432_s10 = smov 80   ;;  %vm1428_vm6 = vcmask 326912  }
  0x19   : > { %2995 = vmatpush3.xpose.msk.msra.mxu0 %vm314_vm0, %v275_v3  ;;  %v269_v16 = vld [vmem:[%s4081_s1 + $0x40] sm:$0xff]  ;;  %v283_v19 = vld [vmem:[%s4081_s1 + $0xb0] sm:$0xff]  ;;  %v282_v21 = vld [vmem:[%s4081_s1 + $0xa8] sm:$0xff]  ;;  %vm1602_vm7 = vcmask 392512   ;;  %vm1776_vm8 = vcmask 458112   ;;  %vm1950_vm9 = vcmask 523712  }
  0x1a   : > { %2996 = vmatprep.subr.msk.mxu0 %vm314_vm0, %v290_v4  ;;  %v267_v20 = vld [vmem:[%s4081_s1 + $0x30] sm:$0xff]  ;;  %v266_v22 = vld [vmem:[%s4081_s1 + $0x28] sm:$0xff]  ;;  %v281_v23 = vld [vmem:[%s4081_s1 + $0xa0] sm:$0xff]  ;;  %vm2121_vm10 = vcmask 589312   ;;  %vm2296_vm11 = vcmask 654912   ;;  %vm2470_vm12 = vcmask 720512  }
  0x1b   : > { %v265_v24 = vld [vmem:[%s4081_s1 + $0x20] sm:$0xff]  ;;  %v280_v25 = vld [vmem:[%s4081_s1 + $0x98] sm:$0xff]  ;;  %v279_v27 = vld [vmem:[%s4081_s1 + $0x90] sm:$0xff]  ;;  %vm2644_vm13 = vcmask 786112  }
  0x1c   : > { %v264_v26 = vld [vmem:[%s4081_s1 + $0x18] sm:$0xff]  ;;  %v263_v28 = vld [vmem:[%s4081_s1 + $0x10] sm:$0xff]  ;;  %v278_v29 = vld [vmem:[%s4081_s1 + $0x88] sm:$0xff] }
  0x1d   : > { %2997 = vmatpush3.xpose.msk.msra.mxu0 %vm314_vm0, %v274_v5  ;;  %v262_v30 = vld [vmem:[%s4081_s1 + $0x8] sm:$0xff]  ;;  %v277_v31 = vld [vmem:[%s4081_s1 + $0x80] sm:$0xff]  ;;  %v296_v33 = vld [vmem:[%s4081_s1 + $0x118] sm:$0xff] }
  0x1e   : > { %2998 = vmatprep.subr.msk.mxu0 %vm314_vm0, %v289_v6  ;;  %v261_v32 = vld [vmem:[%s4081_s1] sm:$0xff]  ;;  %3093 = vmatpush3.xpose.msk.msra.mxu1 %vm314_vm0, %v296_v33  ;;  %v295_v35 = vld [vmem:[%s4081_s1 + $0x110] sm:$0xff]  ;;  %v294_v36 = vld [vmem:[%s4081_s1 + $0x108] sm:$0xff] }
  0x1f   : > { %3094 = vmatprep.subr.mxu1 %v3417_v34  ;;  %v293_v37 = vld [vmem:[%s4081_s1 + $0x100] sm:$0xff] }
  0x20   : > { %v3696_v41 = vld [vmem:[%s4082_s2] sm:$0x7] }
  0x21   : > { %2999 = vmatpush3.xpose.msk.msra.mxu0 %vm314_vm0, %v273_v8  ;;  %v302_v43 = vrot.slane %v3696_v41, %v301_v40  ;;  %v306_v44 = vrot.slane %v3696_v41, %v305_v42 }
  0x22   : > { %3000 = vmatprep.subr.msk.mxu0 %vm314_vm0, %v288_v9  ;;  %3095 = vmatpush3.xpose.msk.msra.mxu1 %vm314_vm0, %v295_v35 }
  0x23   : > { %3096 = vmatprep.subr.mxu1 %v3417_v34 }
  0x25   : > { %3001 = vmatpush3.xpose.msk.msra.mxu0 %vm314_vm0, %v272_v10 }
  0x26   : > { %3002 = vmatprep.subr.msk.mxu0 %vm314_vm0, %v287_v11  ;;  %3097 = vmatpush3.xpose.msk.msra.mxu1 %vm314_vm0, %v294_v36 }
  0x27   : > { %3098 = vmatprep.subr.mxu1 %v3417_v34 }
  0x29   : > { %3003 = vmatpush3.xpose.msk.msra.mxu0 %vm314_vm0, %v271_v12 }
  0x2a   : > { %3004 = vmatprep.subr.msk.mxu0 %vm314_vm0, %v286_v13  ;;  %3099 = vmatpush3.xpose.msk.msra.mxu1 %vm314_vm0, %v293_v37 }
  0x2b   : > { %3103 = vmatprep.subr.mxu1 %v3417_v34 }
  0x2d   : > { %3005 = vmatpush3.xpose.msk.msra.mxu0 %vm314_vm0, %v270_v14  ;;  %3101 = vmatmul.mubr.msk.f32.vlgmr.msra.gmra.mxu1 %vm314_vm0, %v3553_v7 }
  0x2e   : > { %3006 = vmatprep.subr.msk.mxu0 %vm314_vm0, %v285_v15  ;;  %3105 = vmatprep.mubr.msk.f32.mxu1 %vm3418_vm1, %v3417_v34 }
  0x31   : > { %3007 = vmatpush3.xpose.msk.msra.mxu0 %vm314_vm0, %v269_v16 }
  0x32   : > { %3008 = vmatprep.subr.msk.mxu0 %vm314_vm0, %v284_v17 }
  0x35   : > { %3009 = vmatpush3.xpose.msk.msra.mxu0 %vm314_vm0, %v268_v18 }
  0x36   : > { %3010 = vmatprep.subr.msk.mxu0 %vm314_vm0, %v283_v19 }
  0x39   : > { %3011 = vmatpush3.xpose.msk.msra.mxu0 %vm314_vm0, %v267_v20 }
  0x3a   : > { %3012 = vmatprep.subr.msk.mxu0 %vm314_vm0, %v282_v21 }
  0x3d   : > { %3013 = vmatpush3.xpose.msk.msra.mxu0 %vm314_vm0, %v266_v22 }
  0x3e   : > { %3014 = vmatprep.subr.msk.mxu0 %vm314_vm0, %v281_v23 }
  0x41   : > { %3015 = vmatpush3.xpose.msk.msra.mxu0 %vm314_vm0, %v265_v24 }
  0x42   : > { %3016 = vmatprep.subr.msk.mxu0 %vm314_vm0, %v280_v25 }
  0x45   : > { %3017 = vmatpush3.xpose.msk.msra.mxu0 %vm314_vm0, %v264_v26 }
  0x46   : > { %3018 = vmatprep.subr.msk.mxu0 %vm314_vm0, %v279_v27 }
  0x49   : > { %3019 = vmatpush3.xpose.msk.msra.mxu0 %vm314_vm0, %v263_v28 }
  0x4a   : > { %3020 = vmatprep.subr.msk.mxu0 %vm314_vm0, %v278_v29 }
  0x4d   : > { %3021 = vmatpush3.xpose.msk.msra.mxu0 %vm314_vm0, %v262_v30 }
  0x4e   : > { %3022 = vmatprep.subr.msk.mxu0 %vm314_vm0, %v277_v31 }
  0x51   : > { %3023 = vmatpush3.xpose.msk.msra.mxu0 %vm314_vm0, %v261_v32 }
  0x52   : > { %3223 = vmatprep.subr.mxu0 %v3417_v34 }
  0x54   : > { %3025 = vmatmul.mubr.msk.f32.vlgmr.msra.gmra.mxu0 %vm314_vm0, %v3553_v7 }
  0x55   : > { %3247 = vmatprep.mubr.msk.f32.mxu0 %vm3418_vm1, %v3417_v34 }
  0xed   : > { %v3711_v49 = vpop.f32.mrf.mxu1 }
  0xef   : > { %v3102_v50 = vpop.f32.mrf.mxu1 }
 0x114   : > { %v492_v45 = vpop.f32.mrf.mxu0 }
 0x115   : > { %v3701_v46 = vadd.f32 %v492_v45, %v302_v43 }
 0x116   : > { %v494_v47 = vpop.f32.mrf.mxu0 }
 0x117   : > { %v3703_v48 = vadd.f32 %v494_v47, %v306_v44  ;;  %568 = vrot.lane.b32.xlu0 %v3701_v46, %s4087_s18 }
 0x119   : > { %659 = vrot.lane.b32.xlu1 %v3703_v48, %s3420_s19 }
 0x11d   : > { %738 = vrot.lane.b32.xlu1 %v3701_v46, %s3421_s20 }
 0x189   : > { %v569_v51 = vpop.permute.xlu0 %568 }
 0x18a   : > { %3104 = vmatpush3.xpose.msk.msra.mxu1 %vm570_vm2, %v569_v51 }
 0x18b   : > { %3108 = vmatprep.subr.mxu1 %v3417_v34  ;;  %v660_v52 = vpop.permute.xlu1 %659 }
 0x18d   : > { %3106 = vmatmul.mubr.msk.f32.vlgmr.msra.gmra.mxu1 %vm570_vm2, %v3701_v46 }
 0x18e   : > { %3109 = vmatpush3.msra.mxu1 %v660_v52  ;;  %3110 = vmatprep.mubr.msk.f32.mxu1 %vm3418_vm1, %v3417_v34 }
 0x18f   : > { %3113 = vmatprep.subr.mxu1 %v3417_v34  ;;  %v739_v62 = vpop.permute.xlu1 %738 }
 0x24d   : > { %v641_v53 = vpop.f32.mrf.mxu1 }
 0x24e   : > { %v645_v54 = vmul.f32 0.35355338, %v641_v53 }
 0x24f   : > { %v3107_v55 = vpop.f32.mrf.mxu1 }
 0x250   : > { %v646_v56 = vsel %vm570_vm2, %v645_v54, -inf }
 0x251   : > { %647 = vmax.xlane.f32.xlu0 %v646_v56 }
 0x267   : > { %828 = vrot.lane.b32.xlu0 %v3703_v48, %s3422_s26 }
 0x2da   : > { %v648_v57 = vpop.xlane.xlu0 %647 }
 0x2db   : > { %v649_v58 = vsub.f32 %v645_v54, %v648_v57 }
 0x2dd   : > { %v650_v59 = vmul.f32 1.442695, %v649_v58 }
 0x2de   : > { %v829_v3 = vpop.permute.xlu0 %828 }
 0x2df   : > { %3307 = vpow2.f32 %v650_v59 }
 0x2ec   : > { %v3308_v60 = vpop.eup %3307 }
 0x2ed   : > { %v652_v61 = vsel %vm570_vm2, %v3308_v60, 0.0 }
 0x2ee   : > { %653 = vadd.xlane.f32.xlu1 %v652_v61 }
 0x2ff   : > { %736 = vrot.lane.b32.xlu1 %v3701_v46, %s3423_s28 }
 0x377   : > { %v654_v63 = vpop.xlane.xlu1 %653 }
 0x378   : > { %3309 = vrcp.f32 %v654_v63 }
 0x37b   : > { %v737_v2 = vpop.permute.xlu1 %736 }
 0x385   : > { %v3310_v0 = vpop.eup %3309 }
 0x386   : > { %v656_v1 = vmul.f32 %v3310_v0, %v3308_v60 }
 0x388   : > { %657 = vst.msk [vmem:[%s3730_s11] sm:$0xff] %vm570_vm2, %v656_v1  ;;  %3111 = vmatmul.mubr.msk.f32.vlgmr.msra.gmra.mxu1 %vm570_vm2, %v656_v1 }
 0x389   : > { %3114 = vmatpush3.xpose.msk.msra.mxu1 %vm570_vm2, %v739_v62  ;;  %3115 = vmatprep.mubr.msk.f32.mxu1 %vm3418_vm1, %v3417_v34 }
 0x38a   : > { %3118 = vmatprep.subr.mxu1 %v3417_v34 }
 0x38c   : > { %3116 = vmatmul.mubr.msk.f32.vlgmr.msra.gmra.mxu1 %vm570_vm2, %v737_v2 }
 0x38d   : > { %3119 = vmatpush3.msra.mxu1 %v829_v3  ;;  %3120 = vmatprep.mubr.msk.f32.mxu1 %vm3418_vm1, %v3417_v34 }
 0x38e   : > { %3123 = vmatprep.subr.mxu1 %v3417_v34 }
 0x448   : > { %v731_v4 = vpop.f32.mrf.mxu1 }
 0x449   : > { %735 = vst.msk [vmem:[#allocation2] sm:$0xff] %vm570_vm2, %v731_v4 }
 0x44a   : > { %v3112_v5 = vpop.f32.mrf.mxu1 }
 0x44c   : > { %v810_v6 = vpop.f32.mrf.mxu1 }
 0x44d   : > { %v814_v7 = vmul.f32 0.35355338, %v810_v6 }
 0x44e   : > { %v3117_v8 = vpop.f32.mrf.mxu1 }
 0x44f   : > { %v815_v9 = vsel %vm570_vm2, %v814_v7, -inf }
 0x450   : > { %816 = vmax.xlane.f32.xlu1 %v815_v9 }
 0x4d9   : > { %v817_v10 = vpop.xlane.xlu1 %816 }
 0x4da   : > { %v818_v11 = vsub.f32 %v814_v7, %v817_v10 }
 0x4dc   : > { %v819_v12 = vmul.f32 1.442695, %v818_v11 }
 0x4de   : > { %3311 = vpow2.f32 %v819_v12 }
 0x4eb   : > { %v3312_v13 = vpop.eup %3311 }
 0x4ec   : > { %v821_v14 = vsel %vm570_vm2, %v3312_v13, 0.0 }
 0x4ed   : > { %822 = vadd.xlane.f32.xlu0 %v821_v14 }
 0x503   : > { %912 = vrot.lane.b32.xlu0 %v3701_v46, %s3424_s15 }
 0x507   : > { %910 = vrot.lane.b32.xlu0 %v3701_v46, %s3425_s12 }
 0x576   : > { %v823_v15 = vpop.xlane.xlu0 %822 }
 0x577   : > { %3313 = vrcp.f32 %v823_v15 }
 0x57a   : > { %v913_v17 = vpop.permute.xlu0 %912 }
 0x57e   : > { %v911_v19 = vpop.permute.xlu0 %910 }
 0x584   : > { %v3314_v16 = vpop.eup %3313 }
 0x585   : > { %v825_v18 = vmul.f32 %v3314_v16, %v3312_v13 }
 0x587   : > { %2932 = vst.msk [vmem:[%s3730_s11 + $0x8] sm:$0xff] %vm570_vm2, %v825_v18  ;;  %3121 = vmatmul.mubr.msk.f32.vlgmr.msra.gmra.mxu1 %vm570_vm2, %v825_v18 }
 0x588   : > { %3124 = vmatpush3.xpose.msk.msra.mxu1 %vm570_vm2, %v913_v17  ;;  %3125 = vmatprep.mubr.msk.f32.mxu1 %vm3418_vm1, %v3417_v34 }
 0x589   : > { %3128 = vmatprep.subr.mxu1 %v3417_v34 }
 0x58b   : > { %3126 = vmatmul.mubr.msk.f32.vlgmr.msra.gmra.mxu1 %vm570_vm2, %v911_v19 }
 0x58c   : > { %3130 = vmatprep.mubr.msk.f32.mxu1 %vm3418_vm1, %v3417_v34 }
 0x647   : > { %v3760_v20 = vpop.f32.mrf.mxu1 }
 0x649   : > { %v3122_v21 = vpop.f32.mrf.mxu1 }
 0x64b   : > { %v984_v22 = vpop.f32.mrf.mxu1 }
 0x64c   : > { %v988_v23 = vmul.f32 0.35355338, %v984_v22 }
 0x64d   : > { %v3127_v24 = vpop.f32.mrf.mxu1 }
 0x64e   : > { %v989_v25 = vsel %vm570_vm2, %v988_v23, -inf }
 0x64f   : > { %990 = vmax.xlane.f32.xlu1 %v989_v25 }
 0x660   : > { %1002 = vrot.lane.b32.xlu1 %v3703_v48, %s3426_s13 }
 0x664   : > { %1086 = vrot.lane.b32.xlu1 %v3701_v46, %s3427_s14 }
 0x668   : > { %1084 = vrot.lane.b32.xlu1 %v3701_v46, %s3428_s16 }
 0x6d8   : > { %v991_v26 = vpop.xlane.xlu1 %990 }
 0x6d9   : > { %v992_v27 = vsub.f32 %v988_v23, %v991_v26 }
 0x6db   : > { %v993_v28 = vmul.f32 1.442695, %v992_v27 }
 0x6dc   : > { %v1003_v29 = vpop.permute.xlu1 %1002 }
 0x6dd   : > { %3315 = vpow2.f32 %v993_v28  ;;  %3129 = vmatpush3.msra.mxu1 %v1003_v29 }
 0x6de   : > { %3133 = vmatprep.subr.mxu1 %v3417_v34 }
 0x6e0   : > { %v1087_v35 = vpop.permute.xlu1 %1086 }
 0x6e4   : > { %v1085_v37 = vpop.permute.xlu1 %1084 }
 0x6ea   : > { %v3316_v30 = vpop.eup %3315 }
 0x6eb   : > { %v995_v31 = vsel %vm570_vm2, %v3316_v30, 0.0 }
 0x6ec   : > { %996 = vadd.xlane.f32.xlu0 %v995_v31 }
 0x775   : > { %v997_v32 = vpop.xlane.xlu0 %996 }
 0x776   : > { %3317 = vrcp.f32 %v997_v32 }
 0x783   : > { %v3318_v33 = vpop.eup %3317 }
 0x784   : > { %v999_v36 = vmul.f32 %v3318_v33, %v3316_v30 }
 0x786   : > { %2936 = vst.msk [vmem:[%s3730_s11 + $0x10] sm:$0xff] %vm570_vm2, %v999_v36  ;;  %3131 = vmatmul.mubr.msk.f32.vlgmr.msra.gmra.mxu1 %vm570_vm2, %v999_v36 }
 0x787   : > { %3134 = vmatpush3.xpose.msk.msra.mxu1 %vm570_vm2, %v1087_v35  ;;  %3135 = vmatprep.mubr.msk.f32.mxu1 %vm3418_vm1, %v3417_v34 }
 0x788   : > { %3138 = vmatprep.subr.mxu1 %v3417_v34 }
 0x78a   : > { %3136 = vmatmul.mubr.msk.f32.vlgmr.msra.gmra.mxu1 %vm570_vm2, %v1085_v37 }
 0x78b   : > { %3140 = vmatprep.mubr.msk.f32.mxu1 %vm3418_vm1, %v3417_v34 }
 0x846   : > { %v3781_v38 = vpop.f32.mrf.mxu1 }
 0x848   : > { %v3132_v40 = vpop.f32.mrf.mxu1 }
 0x84a   : > { %v1158_v42 = vpop.f32.mrf.mxu1 }
 0x84b   : > { %v1162_v43 = vmul.f32 0.35355338, %v1158_v42 }
 0x84c   : > { %v3137_v44 = vpop.f32.mrf.mxu1 }
 0x84d   : > { %v1163_v45 = vsel %vm570_vm2, %v1162_v43, -inf }
 0x84e   : > { %1164 = vmax.xlane.f32.xlu1 %v1163_v45 }
 0x85f   : > { %1348 = vrot.lane.b32.xlu1 %v3703_v48, %s4087_s18  ;;  %s3433_s18 = smov 72  }
 0x863   : > { %1432 = vrot.lane.b32.xlu1 %v3703_v48, %s3423_s28 }
 0x8d7   : > { %v1165_v47 = vpop.xlane.xlu1 %1164 }
 0x8d8   : > { %v1166_v50 = vsub.f32 %v1162_v43, %v1165_v47 }
 0x8da   : > { %v1167_v51 = vmul.f32 1.442695, %v1166_v50 }
 0x8db   : > { %v1349_v59 = vpop.permute.xlu1 %1348 }
 0x8dc   : > { %3319 = vpow2.f32 %v1167_v51 }
 0x8df   : > { %v1433_v7 = vpop.permute.xlu1 %1432 }
 0x8e9   : > { %v3320_v52 = vpop.eup %3319 }
 0x8ea   : > { %v1169_v53 = vsel %vm570_vm2, %v3320_v52, 0.0 }
 0x8eb   : > { %1170 = vadd.xlane.f32.xlu0 %v1169_v53 }
 0x901   : > { %1176 = vrot.lane.b32.xlu0 %v3703_v48, %s3429_s17 }
 0x905   : > { %1258 = vrot.lane.b32.xlu0 %v3701_v46, %s3430_s29 }
 0x974   : > { %v1171_v54 = vpop.xlane.xlu0 %1170 }
 0x975   : > { %3321 = vrcp.f32 %v1171_v54 }
 0x978   : > { %v1177_v55 = vpop.permute.xlu0 %1176 }
 0x979   : > { %3139 = vmatpush3.msra.mxu1 %v1177_v55 }
 0x97a   : > { %3143 = vmatprep.subr.mxu1 %v3417_v34 }
 0x97c   : > { %v1259_v58 = vpop.permute.xlu0 %1258 }
 0x982   : > { %v3322_v56 = vpop.eup %3321 }
 0x983   : > { %v1173_v57 = vmul.f32 %v3322_v56, %v3320_v52 }
 0x985   : > { %2940 = vst.msk [vmem:[%s3730_s11 + $0x18] sm:$0xff] %vm570_vm2, %v1173_v57  ;;  %3141 = vmatmul.mubr.msk.f32.vlgmr.msra.gmra.mxu1 %vm570_vm2, %v1173_v57 }
 0x986   : > { %3144 = vmatpush3.xpose.msk.msra.mxu1 %vm570_vm2, %v3703_v48  ;;  %3145 = vmatprep.mubr.msk.f32.mxu1 %vm3418_vm1, %v3417_v34 }
 0x987   : > { %3148 = vmatprep.subr.mxu1 %v3417_v34 }
 0x989   : > { %3146 = vmatmul.mubr.msk.f32.vlgmr.msra.gmra.mxu1 %vm570_vm2, %v1259_v58 }
 0x98a   : > { %3149 = vmatpush3.msra.mxu1 %v1349_v59  ;;  %3150 = vmatprep.mubr.msk.f32.mxu1 %vm3418_vm1, %v3417_v34 }
 0x98b   : > { %3153 = vmatprep.subr.mxu1 %v3417_v34 }
 0xa45   : > { %v3806_v60 = vpop.f32.mrf.mxu1 }
 0xa47   : > { %v3142_v61 = vpop.f32.mrf.mxu1 }
 0xa49   : > { %v1330_v62 = vpop.f32.mrf.mxu1 }
 0xa4a   : > { %v1334_v63 = vmul.f32 0.35355338, %v1330_v62 }
 0xa4b   : > { %v3147_v0 = vpop.f32.mrf.mxu1 }
 0xa4c   : > { %v1335_v1 = vsel %vm570_vm2, %v1334_v63, -inf }
 0xa4d   : > { %1336 = vmax.xlane.f32.xlu0 %v1335_v1 }
 0xa63   : > { %1522 = vrot.lane.b32.xlu0 %v3703_v48, %s3421_s20 }
 0xad6   : > { %v1337_v2 = vpop.xlane.xlu0 %1336 }
 0xad7   : > { %v1338_v3 = vsub.f32 %v1334_v63, %v1337_v2 }
 0xad9   : > { %v1339_v4 = vmul.f32 1.442695, %v1338_v3 }
 0xada   : > { %v1523_v12 = vpop.permute.xlu0 %1522 }
 0xadb   : > { %3323 = vpow2.f32 %v1339_v4  ;;  %v309_v4 = vsub.s32 2, %v3690_v39 }
 0xae8   : > { %v3324_v5 = vpop.eup %3323 }
 0xae9   : > { %v1341_v6 = vsel %vm570_vm2, %v3324_v5, 0.0 }
 0xaea   : > { %1342 = vadd.xlane.f32.xlu1 %v1341_v6 }
 0xafb   : > { %1430 = vrot.lane.b32.xlu1 %v3701_v46, %s3431_s9 }
 0xb73   : > { %v1343_v8 = vpop.xlane.xlu1 %1342 }
 0xb74   : > { %3325 = vrcp.f32 %v1343_v8  ;;  %v310_v8 = vrot.slane %v3696_v41, %v309_v4 }
 0xb77   : > { %v1431_v11 = vpop.permute.xlu1 %1430 }
 0xb81   : > { %v3326_v9 = vpop.eup %3325 }
 0xb82   : > { %v1345_v10 = vmul.f32 %v3326_v9, %v3324_v5  ;;  %v3887_v9 = vadd.f32 %v3711_v49, %v310_v8 }
 0xb84   : > { %2944 = vst.msk [vmem:[%s3730_s11 + $0x20] sm:$0xff] %vm570_vm2, %v1345_v10  ;;  %3151 = vmatmul.mubr.msk.f32.vlgmr.msra.gmra.mxu1 %vm570_vm2, %v1345_v10 }
 0xb85   : > { %3154 = vmatpush3.xpose.msk.msra.mxu1 %vm570_vm2, %v1433_v7  ;;  %3155 = vmatprep.mubr.msk.f32.mxu1 %vm3418_vm1, %v3417_v34 }
 0xb86   : > { %3158 = vmatprep.subr.mxu1 %v3417_v34 }
 0xb88   : > { %3156 = vmatmul.mubr.msk.f32.vlgmr.msra.gmra.mxu1 %vm570_vm2, %v1431_v11 }
 0xb89   : > { %3159 = vmatpush3.msra.mxu1 %v1523_v12  ;;  %3160 = vmatprep.mubr.msk.f32.mxu1 %vm3418_vm1, %v3417_v34 }
 0xb8a   : > { %3163 = vmatprep.subr.mxu1 %v3417_v34 }
 0xc44   : > { %v3825_v13 = vpop.f32.mrf.mxu1 }
 0xc46   : > { %v3152_v14 = vpop.f32.mrf.mxu1 }
 0xc48   : > { %v1504_v15 = vpop.f32.mrf.mxu1 }
 0xc49   : > { %v1508_v16 = vmul.f32 0.35355338, %v1504_v15 }
 0xc4a   : > { %v3157_v17 = vpop.f32.mrf.mxu1 }
 0xc4b   : > { %v1509_v18 = vsel %vm570_vm2, %v1508_v16, -inf }
 0xc4c   : > { %1510 = vmax.xlane.f32.xlu1 %v1509_v18 }
 0xc5d   : > { %1696 = vrot.lane.b32.xlu1 %v3703_v48, %s3424_s15 }
 0xc61   : > { %1780 = vrot.lane.b32.xlu1 %v3703_v48, %s3428_s16 }
 0xcd5   : > { %v1511_v19 = vpop.xlane.xlu1 %1510 }
 0xcd6   : > { %v1512_v21 = vsub.f32 %v1508_v16, %v1511_v19 }
 0xcd8   : > { %v1513_v22 = vmul.f32 1.442695, %v1512_v21 }
 0xcd9   : > { %v1697_v30 = vpop.permute.xlu1 %1696 }
 0xcda   : > { %3327 = vpow2.f32 %v1513_v22 }
 0xcdd   : > { %v1781_v47 = vpop.permute.xlu1 %1780 }
 0xce7   : > { %v3328_v23 = vpop.eup %3327 }
 0xce8   : > { %v1515_v24 = vsel %vm570_vm2, %v3328_v23, 0.0 }
 0xce9   : > { %1516 = vadd.xlane.f32.xlu0 %v1515_v24 }
 0xcff   : > { %1606 = vrot.lane.b32.xlu0 %v3703_v48, %s3425_s12 }
 0xd03   : > { %1604 = vrot.lane.b32.xlu0 %v3701_v46, %s3432_s10 }
 0xd72   : > { %v1517_v25 = vpop.xlane.xlu0 %1516 }
 0xd73   : > { %3329 = vrcp.f32 %v1517_v25 }
 0xd76   : > { %v1607_v27 = vpop.permute.xlu0 %1606 }
 0xd7a   : > { %v1605_v29 = vpop.permute.xlu0 %1604 }
 0xd80   : > { %v3330_v26 = vpop.eup %3329 }
 0xd81   : > { %v1519_v28 = vmul.f32 %v3330_v26, %v3328_v23 }
 0xd83   : > { %2948 = vst.msk [vmem:[%s3730_s11 + $0x28] sm:$0xff] %vm570_vm2, %v1519_v28  ;;  %3161 = vmatmul.mubr.msk.f32.vlgmr.msra.gmra.mxu1 %vm570_vm2, %v1519_v28 }
 0xd84   : > { %3164 = vmatpush3.xpose.msk.msra.mxu1 %vm570_vm2, %v1607_v27  ;;  %3165 = vmatprep.mubr.msk.f32.mxu1 %vm3418_vm1, %v3417_v34 }
 0xd85   : > { %3168 = vmatprep.subr.mxu1 %v3417_v34 }
 0xd87   : > { %3166 = vmatmul.mubr.msk.f32.vlgmr.msra.gmra.mxu1 %vm570_vm2, %v1605_v29 }
 0xd88   : > { %3169 = vmatpush3.msra.mxu1 %v1697_v30  ;;  %3170 = vmatprep.mubr.msk.f32.mxu1 %vm3418_vm1, %v3417_v34 }
 0xd89   : > { %3173 = vmatprep.subr.mxu1 %v3417_v34 }
 0xe43   : > { %v3848_v31 = vpop.f32.mrf.mxu1 }
 0xe45   : > { %v3162_v32 = vpop.f32.mrf.mxu1 }
 0xe47   : > { %v1678_v33 = vpop.f32.mrf.mxu1 }
 0xe48   : > { %v1682_v35 = vmul.f32 0.35355338, %v1678_v33 }
 0xe49   : > { %v3167_v36 = vpop.f32.mrf.mxu1 }
 0xe4a   : > { %v1683_v37 = vsel %vm570_vm2, %v1682_v35, -inf }
 0xe4b   : > { %1684 = vmax.xlane.f32.xlu0 %v1683_v37 }
 0xe61   : > { %1870 = vrot.lane.b32.xlu0 %v3703_v48, %s3427_s14 }
 0xed4   : > { %v1685_v40 = vpop.xlane.xlu0 %1684 }
 0xed5   : > { %v1686_v42 = vsub.f32 %v1682_v35, %v1685_v40 }
 0xed7   : > { %v1687_v43 = vmul.f32 1.442695, %v1686_v42 }
 0xed8   : > { %v1871_v54 = vpop.permute.xlu0 %1870 }
 0xed9   : > { %3331 = vpow2.f32 %v1687_v43 }
 0xee6   : > { %v3332_v44 = vpop.eup %3331 }
 0xee7   : > { %v1689_v45 = vsel %vm570_vm2, %v3332_v44, 0.0 }
 0xee8   : > { %1690 = vadd.xlane.f32.xlu1 %v1689_v45 }
 0xef9   : > { %1778 = vrot.lane.b32.xlu1 %v3701_v46, %s3433_s18 }
 0xf71   : > { %v1691_v50 = vpop.xlane.xlu1 %1690 }
 0xf72   : > { %3333 = vrcp.f32 %v1691_v50 }
 0xf75   : > { %v1779_v53 = vpop.permute.xlu1 %1778 }
 0xf7f   : > { %v3334_v51 = vpop.eup %3333 }
 0xf80   : > { %v1693_v52 = vmul.f32 %v3334_v51, %v3332_v44 }
 0xf82   : > { %2952 = vst.msk [vmem:[%s3730_s11 + $0x30] sm:$0xff] %vm570_vm2, %v1693_v52  ;;  %3171 = vmatmul.mubr.msk.f32.vlgmr.msra.gmra.mxu1 %vm570_vm2, %v1693_v52 }
 0xf83   : > { %3174 = vmatpush3.xpose.msk.msra.mxu1 %vm570_vm2, %v1781_v47  ;;  %3175 = vmatprep.mubr.msk.f32.mxu1 %vm3418_vm1, %v3417_v34 }
 0xf84   : > { %3178 = vmatprep.subr.mxu1 %v3417_v34 }
 0xf86   : > { %3176 = vmatmul.mubr.msk.f32.vlgmr.msra.gmra.mxu1 %vm570_vm2, %v1779_v53 }
 0xf87   : > { %3179 = vmatpush3.msra.mxu1 %v1871_v54  ;;  %3180 = vmatprep.mubr.msk.f32.mxu1 %vm3418_vm1, %v3417_v34 }
 0xf88   : > { %3183 = vmatprep.subr.mxu1 %v3417_v34 }
0x1042   : > { %v3867_v55 = vpop.f32.mrf.mxu1 }
0x1044   : > { %v3172_v56 = vpop.f32.mrf.mxu1 }
0x1046   : > { %v1852_v57 = vpop.f32.mrf.mxu1 }
0x1047   : > { %v1856_v58 = vmul.f32 0.35355338, %v1852_v57 }
0x1048   : > { %v3177_v59 = vpop.f32.mrf.mxu1 }
0x1049   : > { %v1857_v61 = vsel %vm570_vm2, %v1856_v58, -inf }
0x104a   : > { %1858 = vmax.xlane.f32.xlu1 %v1857_v61 }
0x105b   : > { %2125 = vrot.lane.b32.xlu1 %v3703_v48, %s3431_s9 }
0x10d3   : > { %v1859_v62 = vpop.xlane.xlu1 %1858 }
0x10d4   : > { %v1860_v63 = vsub.f32 %v1856_v58, %v1859_v62 }
0x10d6   : > { %v1861_v0 = vmul.f32 1.442695, %v1860_v63 }
0x10d7   : > { %v2126_v21 = vpop.permute.xlu1 %2125 }
0x10d8   : > { %3335 = vpow2.f32 %v1861_v0 }
0x10e5   : > { %v3336_v1 = vpop.eup %3335 }
0x10e6   : > { %v1863_v2 = vsel %vm570_vm2, %v3336_v1, 0.0 }
0x10e7   : > { %1864 = vadd.xlane.f32.xlu0 %v1863_v2 }
0x10fd   : > { %1954 = vrot.lane.b32.xlu0 %v3703_v48, %s3430_s29 }
0x1101   : > { %1952 = vrot.lane.b32.xlu0 %v3701_v46, %s3420_s19 }
0x1170   : > { %v1865_v3 = vpop.xlane.xlu0 %1864 }
0x1171   : > { %3337 = vrcp.f32 %v1865_v3 }
0x1174   : > { %v1955_v6 = vpop.permute.xlu0 %1954 }
0x1178   : > { %v1953_v39 = vpop.permute.xlu0 %1952 }
0x117e   : > { %v3338_v5 = vpop.eup %3337 }
0x117f   : > { %v1867_v7 = vmul.f32 %v3338_v5, %v3336_v1 }
0x1181   : > { %2956 = vst.msk [vmem:[%s3730_s11 + $0x38] sm:$0xff] %vm570_vm2, %v1867_v7  ;;  %3181 = vmatmul.mubr.msk.f32.vlgmr.msra.gmra.mxu1 %vm570_vm2, %v1867_v7 }
0x1182   : > { %3184 = vmatpush3.xpose.msk.msra.mxu1 %vm570_vm2, %v1955_v6  ;;  %3185 = vmatprep.mubr.msk.f32.mxu1 %vm3418_vm1, %v3417_v34 }
0x1183   : > { %3188 = vmatprep.subr.mxu1 %v3417_v34 }
0x1185   : > { %3186 = vmatmul.mubr.msk.f32.vlgmr.msra.gmra.mxu1 %vm570_vm2, %v1953_v39 }
0x1186   : > { %3189 = vmatpush3.msra.mxu1 %v3887_v9  ;;  %3190 = vmatprep.mubr.msk.f32.mxu1 %vm3418_vm1, %v3417_v34 }
0x1187   : > { %3193 = vmatprep.subr.mxu1 %v3417_v34 }
0x1241   : > { %v3894_v41 = vpop.f32.mrf.mxu1 }
0x1243   : > { %v3182_v10 = vpop.f32.mrf.mxu1 }
0x1245   : > { %v2026_v11 = vpop.f32.mrf.mxu1 }
0x1246   : > { %v2030_v12 = vmul.f32 0.35355338, %v2026_v11 }
0x1247   : > { %v3187_v14 = vpop.f32.mrf.mxu1 }
0x1248   : > { %v2031_v15 = vsel %vm570_vm2, %v2030_v12, -inf }
0x1249   : > { %2032 = vmax.xlane.f32.xlu0 %v2031_v15 }
0x125f   : > { %2216 = vrot.lane.b32.xlu0 %v3887_v9, %s3423_s28 }
0x12d2   : > { %v2033_v49 = vpop.xlane.xlu0 %2032 }
0x12d3   : > { %v2034_v16 = vsub.f32 %v2030_v12, %v2033_v49 }
0x12d5   : > { %v2035_v17 = vmul.f32 1.442695, %v2034_v16 }
0x12d6   : > { %v2217_v26 = vpop.permute.xlu0 %2216 }
0x12d7   : > { %3339 = vpow2.f32 %v2035_v17 }
0x12e4   : > { %v3340_v18 = vpop.eup %3339 }
0x12e5   : > { %v2037_v19 = vsel %vm570_vm2, %v3340_v18, 0.0 }
0x12e6   : > { %2038 = vadd.xlane.f32.xlu1 %v2037_v19 }
0x12f7   : > { %2123 = vrot.lane.b32.xlu1 %v3701_v46, %s3422_s26 }
0x136f   : > { %v2039_v22 = vpop.xlane.xlu1 %2038 }
0x1370   : > { %3341 = vrcp.f32 %v2039_v22  ;;  %v2658_v22 = vld [vmem:[%s4083_s3 + $0x58] sm:$0xff] }
0x1371   : > { %3224 = vmatpush3.xpose.msk.msra.mxu0 %vm314_vm0, %v2658_v22 }
0x1372   : > { %3225 = vmatprep.subr.mxu0 %v3417_v34 }
0x1373   : > { %v2124_v25 = vpop.permute.xlu1 %2123 }
0x137d   : > { %v3342_v23 = vpop.eup %3341 }
0x137e   : > { %v2041_v24 = vmul.f32 %v3342_v23, %v3340_v18  ;;  %v2657_v23 = vld [vmem:[%s4083_s3 + $0x50] sm:$0xff] }
0x137f   : > { %3226 = vmatpush3.xpose.msk.msra.mxu0 %vm314_vm0, %v2657_v23 }
0x1380   : > { %2960 = vst.msk [vmem:[%s3730_s11 + $0x40] sm:$0xff] %vm570_vm2, %v2041_v24  ;;  %3191 = vmatmul.mubr.msk.f32.vlgmr.msra.gmra.mxu1 %vm570_vm2, %v2041_v24  ;;  %3227 = vmatprep.subr.mxu0 %v3417_v34  ;;  %v2656_v24 = vld [vmem:[%s4083_s3 + $0x48] sm:$0xff] }
0x1381   : > { %3194 = vmatpush3.xpose.msk.msra.mxu1 %vm570_vm2, %v2126_v21  ;;  %3195 = vmatprep.mubr.msk.f32.mxu1 %vm3418_vm1, %v3417_v34 }
0x1382   : > { %3198 = vmatprep.subr.mxu1 %v3417_v34 }
0x1383   : > { %3228 = vmatpush3.xpose.msk.msra.mxu0 %vm314_vm0, %v2656_v24 }
0x1384   : > { %3196 = vmatmul.mubr.msk.f32.vlgmr.msra.gmra.mxu1 %vm570_vm2, %v2124_v25  ;;  %3229 = vmatprep.subr.mxu0 %v3417_v34  ;;  %v2655_v25 = vld [vmem:[%s4083_s3 + $0x40] sm:$0xff] }
0x1385   : > { %3199 = vmatpush3.msra.mxu1 %v2217_v26  ;;  %3200 = vmatprep.mubr.msk.f32.mxu1 %vm3418_vm1, %v3417_v34  ;;  %v2654_v26 = vld [vmem:[%s4083_s3 + $0x38] sm:$0xff] }
0x1386   : > { %3203 = vmatprep.subr.mxu1 %v3417_v34 }
0x1387   : > { %3230 = vmatpush3.xpose.msk.msra.mxu0 %vm314_vm0, %v2655_v25 }
0x1388   : > { %3231 = vmatprep.subr.mxu0 %v3417_v34 }
0x138b   : > { %3232 = vmatpush3.xpose.msk.msra.mxu0 %vm314_vm0, %v2654_v26 }
0x138c   : > { %3233 = vmatprep.subr.mxu0 %v3417_v34 }
0x1440   : > { %v3913_v27 = vpop.f32.mrf.mxu1 }
0x1442   : > { %v3192_v28 = vpop.f32.mrf.mxu1 }
0x1443   : > { %v2652_v28 = vld [vmem:[%s4083_s3 + $0x28] sm:$0xff] }
0x1444   : > { %v2197_v29 = vpop.f32.mrf.mxu1 }
0x1445   : > { %v2201_v30 = vmul.f32 0.35355338, %v2197_v29  ;;  %v2651_v29 = vld [vmem:[%s4083_s3 + $0x20] sm:$0xff] }
0x1446   : > { %v3197_v32 = vpop.f32.mrf.mxu1 }
0x1447   : > { %v2202_v33 = vsel %vm570_vm2, %v2201_v30, -inf  ;;  %v2649_v32 = vld [vmem:[%s4083_s3 + $0x10] sm:$0xff] }
0x1448   : > { %2203 = vmax.xlane.f32.xlu1 %v2202_v33  ;;  %v2648_v33 = vld [vmem:[%s4083_s3 + $0x8] sm:$0xff] }
0x14d1   : > { %v2204_v35 = vpop.xlane.xlu1 %2203 }
0x14d2   : > { %v2205_v36 = vsub.f32 %v2201_v30, %v2204_v35  ;;  %v2650_v30 = vld [vmem:[%s4083_s3 + $0x18] sm:$0xff]  ;;  %v2647_v35 = vld [vmem:[%s4083_s3] sm:$0xff] }
0x14d4   : > { %v2206_v37 = vmul.f32 1.442695, %v2205_v36 }
0x14d6   : > { %3343 = vpow2.f32 %v2206_v37 }
0x14e3   : > { %v3344_v40 = vpop.eup %3343 }
0x14e4   : > { %v2208_v42 = vsel %vm570_vm2, %v3344_v40, 0.0 }
0x14e5   : > { %2209 = vadd.xlane.f32.xlu0 %v2208_v42 }
0x14fb   : > { %2300 = vrot.lane.b32.xlu0 %v3703_v48, %s3432_s10 }
0x14ff   : > { %2298 = vrot.lane.b32.xlu0 %v3701_v46, %s3426_s13 }
0x156e   : > { %v2210_v43 = vpop.xlane.xlu0 %2209 }
0x156f   : > { %3345 = vrcp.f32 %v2210_v43 }
0x1572   : > { %v2301_v45 = vpop.permute.xlu0 %2300 }
0x1576   : > { %v2299_v50 = vpop.permute.xlu0 %2298 }
0x157c   : > { %v3346_v44 = vpop.eup %3345 }
0x157d   : > { %v2212_v47 = vmul.f32 %v3346_v44, %v3344_v40 }
0x157f   : > { %2964 = vst.msk [vmem:[%s3730_s11 + $0x48] sm:$0xff] %vm570_vm2, %v2212_v47  ;;  %3201 = vmatmul.mubr.msk.f32.vlgmr.msra.gmra.mxu1 %vm570_vm2, %v2212_v47 }
0x1580   : > { %3204 = vmatpush3.xpose.msk.msra.mxu1 %vm570_vm2, %v2301_v45  ;;  %3205 = vmatprep.mubr.msk.f32.mxu1 %vm3418_vm1, %v3417_v34 }
0x1581   : > { %3208 = vmatprep.subr.mxu1 %v3417_v34 }
0x1583   : > { %3206 = vmatmul.mubr.msk.f32.vlgmr.msra.gmra.mxu1 %vm570_vm2, %v2299_v50 }
0x1584   : > { %3210 = vmatprep.mubr.msk.f32.mxu1 %vm3418_vm1, %v3417_v34 }
0x163f   : > { %v2288_v51 = vpop.f32.mrf.mxu1 }
0x1641   : > { %v3202_v52 = vpop.f32.mrf.mxu1 }
0x1643   : > { %v2372_v53 = vpop.f32.mrf.mxu1 }
0x1644   : > { %v2376_v54 = vmul.f32 0.35355338, %v2372_v53 }
0x1645   : > { %v3207_v56 = vpop.f32.mrf.mxu1 }
0x1646   : > { %v2377_v57 = vsel %vm570_vm2, %v2376_v54, -inf }
0x1647   : > { %2378 = vmax.xlane.f32.xlu1 %v2377_v57 }
0x1658   : > { %2390 = vrot.lane.b32.xlu1 %v3887_v9, %s3425_s12 }
0x165c   : > { %2474 = vrot.lane.b32.xlu1 %v3703_v48, %s3433_s18 }
0x1660   : > { %2472 = vrot.lane.b32.xlu1 %v3701_v46, %s3429_s17 }
0x16d0   : > { %v2379_v58 = vpop.xlane.xlu1 %2378 }
0x16d1   : > { %v2380_v59 = vsub.f32 %v2376_v54, %v2379_v58 }
0x16d3   : > { %v2381_v61 = vmul.f32 1.442695, %v2380_v59 }
0x16d4   : > { %v2391_v62 = vpop.permute.xlu1 %2390 }
0x16d5   : > { %3347 = vpow2.f32 %v2381_v61  ;;  %3209 = vmatpush3.msra.mxu1 %v2391_v62 }
0x16d6   : > { %3213 = vmatprep.subr.mxu1 %v3417_v34 }
0x16d8   : > { %v2475_v48 = vpop.permute.xlu1 %2474 }
0x16dc   : > { %v2473_v46 = vpop.permute.xlu1 %2472 }
0x16e2   : > { %v3348_v63 = vpop.eup %3347 }
0x16e3   : > { %v2383_v0 = vsel %vm570_vm2, %v3348_v63, 0.0 }
0x16e4   : > { %2384 = vadd.xlane.f32.xlu0 %v2383_v0 }
0x176d   : > { %v2385_v1 = vpop.xlane.xlu0 %2384 }
0x176e   : > { %3349 = vrcp.f32 %v2385_v1 }
0x177b   : > { %v3350_v2 = vpop.eup %3349 }
0x177c   : > { %v2387_v3 = vmul.f32 %v3350_v2, %v3348_v63 }
0x177e   : > { %2968 = vst.msk [vmem:[%s3730_s11 + $0x50] sm:$0xff] %vm570_vm2, %v2387_v3  ;;  %3211 = vmatmul.mubr.msk.f32.vlgmr.msra.gmra.mxu1 %vm570_vm2, %v2387_v3 }
0x177f   : > { %3214 = vmatpush3.xpose.msk.msra.mxu1 %vm570_vm2, %v2475_v48  ;;  %3215 = vmatprep.mubr.msk.f32.mxu1 %vm3418_vm1, %v3417_v34 }
0x1780   : > { %3218 = vmatprep.subr.mxu1 %v3417_v34 }
0x1782   : > { %3216 = vmatmul.mubr.msk.f32.vlgmr.msra.gmra.mxu1 %vm570_vm2, %v2473_v46 }
0x1783   : > { %3220 = vmatprep.mubr.msk.f32.mxu1 %vm3418_vm1, %v3417_v34 }
0x183e   : > { %v2462_v4 = vpop.f32.mrf.mxu1 }
0x1840   : > { %v3212_v5 = vpop.f32.mrf.mxu1 }
0x1842   : > { %v2546_v6 = vpop.f32.mrf.mxu1 }
0x1843   : > { %v2550_v7 = vmul.f32 0.35355338, %v2546_v6 }
0x1844   : > { %v3217_v8 = vpop.f32.mrf.mxu1 }
0x1845   : > { %v2551_v39 = vsel %vm570_vm2, %v2550_v7, -inf }
0x1846   : > { %2552 = vmax.xlane.f32.xlu1 %v2551_v39 }
0x1857   : > { %1253 = vrot.lane.b32.xlu1 %v3806_v60, %s3421_s20 }
0x185b   : > { %2118 = vrot.lane.b32.xlu1 %v3913_v27, %s3420_s19  ;;  %s4090_s19 = smov 32   ;;  %v2653_v27 = vld [vmem:[%s4083_s3 + $0x30] sm:$0xff] }
0x185c   : > { %3234 = vmatpush3.xpose.msk.msra.mxu0 %vm314_vm0, %v2653_v27 }
0x185d   : > { %3235 = vmatprep.subr.mxu0 %v3417_v34 }
0x185f   : > { %2467 = vrot.lane.b32.xlu1 %v2462_v4, %s3432_s10 }
0x1860   : > { %3236 = vmatpush3.xpose.msk.msra.mxu0 %vm314_vm0, %v2652_v28 }
0x1861   : > { %3237 = vmatprep.subr.mxu0 %v3417_v34 }
0x1864   : > { %3238 = vmatpush3.xpose.msk.msra.mxu0 %vm314_vm0, %v2651_v29 }
0x1865   : > { %3239 = vmatprep.subr.mxu0 %v3417_v34 }
0x1868   : > { %3240 = vmatpush3.xpose.msk.msra.mxu0 %vm314_vm0, %v2650_v30 }
0x1869   : > { %3241 = vmatprep.subr.mxu0 %v3417_v34 }
0x186c   : > { %3242 = vmatpush3.xpose.msk.msra.mxu0 %vm314_vm0, %v2649_v32 }
0x186d   : > { %3243 = vmatprep.subr.mxu0 %v3417_v34 }
0x1870   : > { %3244 = vmatpush3.xpose.msk.msra.mxu0 %vm314_vm0, %v2648_v33 }
0x1871   : > { %3245 = vmatprep.subr.mxu0 %v3417_v34  ;;  %v2974_v34 = vld [vmem:[%s4084_s4] ss:$0 sm:$0xff] }
0x1874   : > { %3246 = vmatpush3.xpose.msk.msra.mxu0 %vm314_vm0, %v2647_v35 }
0x18cf   : > { %v2553_v10 = vpop.xlane.xlu1 %2552 }
0x18d0   : > { %v2554_v11 = vsub.f32 %v2550_v7, %v2553_v10 }
0x18d2   : > { %v2555_v12 = vmul.f32 1.442695, %v2554_v11 }
0x18d4   : > { %3351 = vpow2.f32 %v2555_v12 }
0x18e1   : > { %v3352_v14 = vpop.eup %3351 }
0x18e2   : > { %v2557_v15 = vsel %vm570_vm2, %v3352_v14, 0.0 }
0x18e3   : > { %2558 = vadd.xlane.f32.xlu0 %v2557_v15 }
0x18f9   : > { %2564 = vrot.lane.b32.xlu0 %v3887_v9, %s3428_s16 }
0x18fd   : > { %905 = vrot.lane.b32.xlu0 %v3760_v20, %s3427_s14 }
0x1901   : > { %1079 = vrot.lane.b32.xlu0 %v3781_v38, %s3424_s15 }
0x1905   : > { %1425 = vrot.lane.b32.xlu0 %v3825_v13, %s4090_s19 }
0x1909   : > { %1599 = vrot.lane.b32.xlu0 %v3848_v31, %s3429_s17  ;;  %v1254_v31 = vpop.permute.xlu1 %1253  ;;  %s241_s17 = sand.u32 1, %s3407_s22  }
0x190a   : > { %s2886_s29 = sshll.u32 %s241_s17, 3  ;;  %s2777_s15 = scalar_lea.sflag [#allocation4], %s241_s17 }
0x190b   : > { %s243_s20 = scalar_lea.vmem [#allocation3], %s2886_s29 }
0x190d   : > { %1773 = vrot.lane.b32.xlu0 %v3867_v55, %s3426_s13  ;;  %v2119_v17 = vpop.permute.xlu1 %2118 }
0x1911   : > { %1947 = vrot.lane.b32.xlu0 %v3894_v41, %s3422_s26  ;;  %v2468_v21 = vpop.permute.xlu1 %2467  ;;  %s2795_s26 = sshll.u32 %s243_s20, 4  ;;  %s2796_s26 = int_to_ptr.vmem [resolvable:$true] %s2795_s26 }
0x1912   : > { %s3355_s12 = scalar_lea.vmem %s2796_s26, 128 }
0x1913   : > { %p3356_p11 = scmp.ne.s32.totalorder %s2796_s26, %s3355_s12 }
0x1915   : > { %2293 = vrot.lane.b32.xlu0 %v2288_v51, %s3433_s18  ;;  %s2989_s18 = sshll.u32 %s3491_s25, 7  ;;  %p3357_p12 = pnand %p3356_p11, %p3508_p5 }
0x1916   : > { %s3434_s25 = smov [#allocation3]  }
0x1917   : > { %p3358_p13 = pneg %p3357_p12  ;;  %s3359_s13 = sshll.u32 %s3434_s25, 4  ;;  %s3360_s13 = int_to_ptr.vmem [resolvable:$false] %s3359_s13 }
0x1918   : > { %s3361_s14 = scalar_lea.vmem %s3360_s13, 256  ;;  %p3362_p0 = scmp.lt.s32.totalorder %s2796_s26, %s3360_s13 }
0x1919   : > { %p3363_p1 = scmp.lt.s32.totalorder %s3361_s14, %s3355_s12 }
0x191b   : > { %p3364_p2 = por %p3363_p1, %p3362_p0 }
0x191d   : > { %p3365_p3 = pnand %p3364_p2, %p3358_p13 }
0x196c   : > { %v2559_v60 = vpop.xlane.xlu0 %2558 }
0x196d   : > { %3353 = vrcp.f32 %v2559_v60 }
0x1970   : > { %v2565_v20 = vpop.permute.xlu0 %2564 }
0x1971   : > { %3219 = vmatpush3.msra.mxu1 %v2565_v20 }
0x1974   : > { %v906_v38 = vpop.permute.xlu0 %905 }
0x1975   : > { %909 = vst.msk [vmem:[#allocation2] sm:$0xff] %vm908_vm3, %v906_v38 }
0x1978   : > { %v1080_v13 = vpop.permute.xlu0 %1079 }
0x1979   : > { %1083 = vst.msk [vmem:[#allocation2] sm:$0xff] %vm1082_vm4, %v1080_v13 }
0x197a   : > { %v3354_v9 = vpop.eup %3353  ;;  %1257 = vst.msk [vmem:[#allocation2] sm:$0xff] %vm1256_vm5, %v1254_v31 }
0x197b   : > { %v2561_v55 = vmul.f32 %v3354_v9, %v3352_v14 }
0x197c   : > { %v1426_v41 = vpop.permute.xlu0 %1425 }
0x197d   : > { %1429 = vst.msk [vmem:[#allocation2] sm:$0xff] %vm1428_vm6, %v1426_v41  ;;  %3221 = vmatmul.mubr.msk.f32.vlgmr.msra.gmra.mxu1 %vm570_vm2, %v2561_v55 }
0x197e   : > { %2972 = vst.msk [vmem:[%s3730_s11 + $0x58] sm:$0xff] %vm570_vm2, %v2561_v55  ;;  %s4044_s11 = scalar_lea.hbm %s4085_s5, %s2989_s18 }
0x1980   : > { %v1600_v49 = vpop.permute.xlu0 %1599 }
0x1981   : > { %1603 = vst.msk [vmem:[#allocation2] sm:$0xff] %vm1602_vm7, %v1600_v49 }
0x1984   : > { %v1774_v16 = vpop.permute.xlu0 %1773 }
0x1985   : > { %1777 = vst.msk [vmem:[#allocation2] sm:$0xff] %vm1776_vm8, %v1774_v16 }
0x1988   : > { %v1948_v18 = vpop.permute.xlu0 %1947 }
0x1989   : > { %1951 = vst.msk [vmem:[#allocation2] sm:$0xff] %vm1950_vm9, %v1948_v18 }
0x198a   : > { %2122 = vst.msk [vmem:[#allocation2] sm:$0xff] %vm2121_vm10, %v2119_v17 }
0x198c   : > { %v2294_v19 = vpop.permute.xlu0 %2293 }
0x198d   : > { %2297 = vst.msk [vmem:[#allocation2] sm:$0xff] %vm2296_vm11, %v2294_v19 }
0x198e   : > { %2471 = vst.msk [vmem:[#allocation2] sm:$0xff] %vm2470_vm12, %v2468_v21 }
0x1a3d   : > { %v2636_v36 = vpop.f32.mrf.mxu1 }
0x1a3e   : > { %2641 = vrot.lane.b32.xlu0 %v2636_v36, %s3431_s9 }
0x1a3f   : > { %v3222_v37 = vpop.f32.mrf.mxu1 }
0x1ab0   : > { %v2642_v40 = vpop.permute.xlu0 %2641 }
0x1ab1   : > { %2645 = vst.msk [vmem:[#allocation2] sm:$0xff] %vm2644_vm13, %v2642_v40 }
0x1ab8   : > { %v2646_v42 = vld [vmem:[#allocation2] sm:$0xff] }
0x1ab9   : > { %3248 = vmatmul.mubr.msk.f32.vlgmr.msra.gmra.mxu0 %vm314_vm0, %v2646_v42 }
0x1b79   : > { %v2771_v43 = vpop.f32.mrf.mxu0 }
0x1b7a   : > { %v2772_v44 = vadd.f32 %v2974_v34, %v2771_v43 }
0x1b7b   : > { %v3249_v45 = vpop.f32.mrf.mxu0 }
0x1b7c   : > { %2775 = vst.msk [vmem:[%s243_s20] sm:$0xff] %vm314_vm0, %v2772_v44 }
0x1b7d   : > { %3368 = shalt.err (!%p3365_p3)
}
0x1b7e   : > { %s3369_s16 = scalar_lea.hbm %s4044_s11, 128  ;;  %s3373_s10 = scalar_lea.hbm %s4085_s5, 256 }
0x1b7f   : > { %p3370_p4 = scmp.ne.s32.totalorder %s4044_s11, %s3369_s16  ;;  %p3374_p9 = scmp.lt.s32.totalorder %s4044_s11, %s4085_s5 }
0x1b80   : > { %p3375_p10 = scmp.lt.s32.totalorder %s3373_s10, %s3369_s16 }
0x1b81   : > { %p3371_p7 = pnand %p3370_p4, %p3508_p5 }
0x1b82   : > { %p3376_p11 = por %p3375_p10, %p3374_p9 }
0x1b83   : > { %p3372_p8 = pneg %p3371_p7 }
0x1b85   : > { %p3377_p12 = pnand %p3376_p11, %p3372_p8 }
0x1b87   : > { %3380 = shalt.err (!%p3377_p12)
}
0x1b88   : > { %3251 = dma.vmem_to_hbm [thread:$0]  (%p3508_p5), %s2796_s26, 128, %s4044_s11, %s2777_s15  }
0x1b89 PF: > { %p3257_p13 = scmp.ge.s32.totalorder %s3415_s24, 2  ;;  %s2810_s20 = sand.u32 1, %s3403_s21  }
0x1b8a   : > { %s2811_s9 = scalar_lea.sflag [#allocation4], %s2810_s20 }
0x1b8b   : > { %p3254_p0 = pnand %p3257_p13, %p3512_p6 }
0x1b8d   : > { %p3255_p1 = pneg %p3254_p0 }
0x1b8f   : > { %3398 = dma.done.wait (%p3255_p1), %s2811_s9, 128  }
0x1b90   : > { %3400 = vsyncadd (%p3255_p1), %s2811_s9, 4294967168  ;;  %p17_p2 = scmp.ge.s32.totalorder %s3495_s27, 4   ;;  %s4091_s21 = smov %s3407_s22 }
0x1b91   : > { %s4092_s22 = smov %s3411_s23  ;;  %s4093_s23 = smov %s3506_s30 }
0x1b92   : > { %s4094_s24 = smov %s3495_s27  ;;  %19 = sbr.rel (!%p17_p2) target bundleno = 3 (0x3), region = 98 }
0x1b97   :  { %2824 = vsyncpa [#allocation4], 1 }
0x1b98   :  { %2826 = vsyncpa [#allocation4 + $0x1], 1 }

</bundles_post_ra>
